<compile_context>
chip_gen: v6e
topology: v6e:2x2x1
jax: 0.10.0
libtpu: 0.0.40
codegen_flags: <defaults>
</compile_context>

<pallas_src>
import jax
import jax.numpy as jnp
from jax import lax
from jax.experimental import pallas as pl
from jax.experimental.pallas import tpu as pltpu

EPS = 1e-8  # F.cosine_similarity default eps (per-vector norm clamp)


def _info_prototype_kernel(x_ref, logits_ref, proto_ref, inter_ref):
    x = x_ref[...].astype(jnp.float32)            # (N, D) f32 for norm/residual
    xb = x_ref[...].astype(jnp.bfloat16)          # (N, D) bf16 MXU operand
    logits = logits_ref[...].astype(jnp.float32)  # (N, C)
    n, d = x.shape
    c = logits.shape[1]

    # ---- softmax stats without materializing probs -------------------------
    # max softmax prob = exp(lmax - lmax) / sum(exp(l - lmax)) = 1 / denom
    lmax = jnp.max(logits, axis=1, keepdims=True)                    # (N, 1)
    denom = jnp.sum(jnp.exp(logits - lmax), axis=1, keepdims=True)   # (N, 1)
    max_prob = 1.0 / denom                                           # exact
    # argmax taken exactly on logits (softmax is monotonic); ties -> first idx
    cls_iota = lax.broadcasted_iota(jnp.int32, (n, c), 1)            # (N, C)
    is_max = logits >= lmax
    max_cls = jnp.min(jnp.where(is_max, cls_iota, c), axis=1,
                      keepdims=True)                                 # (N, 1)

    # ---- graph(): cosine similarity via pre-normalized features ------------
    sq_norm = jnp.sum(x * x, axis=1, keepdims=True)                  # (N, 1)
    inv_norm = lax.rsqrt(jnp.maximum(sq_norm, EPS * EPS))            # 1/max(||x||, eps)
    xn = (x * inv_norm).astype(jnp.bfloat16)                         # (N, D)

    if n <= d:
        # (N, N) route: cos = xn @ xn.T, agg = cos @ x
        cos = lax.dot_general(xn, xn, (((1,), (1,)), ((), ())),
                              preferred_element_type=jnp.float32)    # (N, N)
        agg = jnp.dot(cos.astype(jnp.bfloat16), xb,
                      preferred_element_type=jnp.float32)            # (N, D)
    else:
        # associativity swap: agg = xn @ (xn.T @ x); gram is a fixed (D, D)
        gram = lax.dot_general(xn, xb, (((0,), (0,)), ((), ())),
                               preferred_element_type=jnp.float32)   # (D, D)
        agg = jnp.dot(xn, gram.astype(jnp.bfloat16),
                      preferred_element_type=jnp.float32)            # (N, D)
    x_agg = agg + x                                                  # (N, D)

    # ---- update_prototype(): scatter-mean as a one-hot matmul --------------
    onehot = (cls_iota == max_cls).astype(jnp.float32)               # (N, C)
    count = jnp.sum(onehot, axis=0, keepdims=True)                   # (1, C)
    inv_count = jnp.where(count > 0.0,
                          1.0 / jnp.maximum(count, 1.0), 0.0)        # exact
    # fold both per-row max_prob and per-class 1/count into the C=16-wide
    # one-hot (1 vreg) instead of the D=512-wide activations (32 vregs)
    weights = onehot * (inv_count * max_prob)                        # (N, C)
    protos = lax.dot_general(weights, x_agg, (((0,), (0,)), ((), ())),
                             preferred_element_type=jnp.float32)     # (C, D)

    proto_ref[...] = protos
    # inter[i, j, :] = prototypes[j] - prototypes[i]; stored at inter_ref.dtype
    # (bf16 by default — halves the dominant HBM write of this kernel).
    inter_ref[...] = (protos[None, :, :] - protos[:, None, :]).astype(
        inter_ref.dtype)


def _vmem_bytes_estimate(n, d, c, x_itemsize, logits_itemsize, inter_itemsize):
    # Double-buffered pipelined I/O tiles.
    est = 2 * (n * d * x_itemsize + n * c * logits_itemsize)
    est += 2 * (c * d * 4 + c * c * d * inter_itemsize)
    # In-kernel temporaries: x f32, xb bf16, xn bf16, x_agg f32.
    est += n * d * (4 + 2 + 2 + 4)
    # cos (N<=D) or gram (N>D), f32 + bf16 copy.
    est += (n * n if n <= d else d * d) * (4 + 2)
    # protos f32 + inter f32 before the dtype cast.
    est += c * d * 4 + c * c * d * 4
    return est


def _choose_vmem_limit(n, d, c, x_itemsize, logits_itemsize, inter_itemsize):
    est = _vmem_bytes_estimate(n, d, c, x_itemsize, logits_itemsize,
                               inter_itemsize)
    want = int(est * 1.25)  # headroom for compiler temps / layout packing
    try:
        cap = int(pltpu.get_tpu_info().vmem_capacity_bytes)
    except Exception:  # interpret mode / older runtime: assume smallest gen
        cap = 64 << 20  # v7x per-TensorCore VMEM
    usable = cap - (4 << 20)  # leave a small reserve for the runtime
    if want > usable:
        # TODO(synk): tile the aggregation (row blocks of xn against the fixed
        # (D, D) gram) if a single group ever exceeds physical VMEM.
        raise NotImplementedError(
            f"working set ~{want >> 20} MiB exceeds usable VMEM "
            f"(~{usable >> 20} MiB) on this TPU generation; tile the "
            "aggregation for this size.")
    # Never request less than 32 MiB (the v6e/v7x scoped default) so the
    # estimate never artificially starves the compiler on small shapes.
    return min(max(want, 32 << 20), usable)


def information_prototype_forward(x, class_logits, *,
                                  inter_dtype=jnp.bfloat16):
    """Forward pass of InformationPrototype.

    Accepts a single group (N, D)/(N, C) — the module's shape — or a batch of
    groups (G, N, D)/(G, N, C), which maps to a 'parallel' grid axis (uses both
    v7x TensorCores and amortizes fixed call overhead).
    """
    squeeze = x.ndim == 2
    if squeeze:
        x = x[None]
        class_logits = class_logits[None]
    if x.ndim != 3 or class_logits.ndim != 3:
        raise ValueError("expected (N, D)/(N, C) or (G, N, D)/(G, N, C)")
    g, n, d = x.shape
    c = class_logits.shape[-1]

    inter_itemsize = jnp.dtype(inter_dtype).itemsize
    vmem_limit = _choose_vmem_limit(n, d, c, x.dtype.itemsize,
                                    class_logits.dtype.itemsize,
                                    inter_itemsize)

    mm_flops = (2 * n * n * d * 2) if n <= d else (2 * n * d * d * 2)
    cost = pl.CostEstimate(
        flops=g * (mm_flops + 2 * n * c * d + c * c * d),
        transcendentals=g * (n * c + n),
        bytes_accessed=(g * n * d * x.dtype.itemsize
                        + g * n * c * class_logits.dtype.itemsize
                        + g * c * d * 4
                        + g * c * c * d * inter_itemsize),
    )

    protos, inter = pl.pallas_call(
        _info_prototype_kernel,
        grid=(g,),
        out_shape=(
            jax.ShapeDtypeStruct((g, c, d), jnp.float32),
            jax.ShapeDtypeStruct((g, c, c, d), inter_dtype),
        ),
        in_specs=[
            pl.BlockSpec((None, n, d), lambda gi: (gi, 0, 0)),
            pl.BlockSpec((None, n, c), lambda gi: (gi, 0, 0)),
        ],
        out_specs=(
            pl.BlockSpec((None, c, d), lambda gi: (gi, 0, 0)),
            pl.BlockSpec((None, c, c, d), lambda gi: (gi, 0, 0, 0)),
        ),
        compiler_params=pltpu.CompilerParams(
            dimension_semantics=("parallel",),
            vmem_limit_bytes=vmem_limit,
        ),
        cost_estimate=cost,
    )(x, class_logits)

    if squeeze:
        return protos[0], inter[0]
    return protos, inter


def _reference(x, logits):
    """Pure-JAX f32 reference mirroring the PyTorch forward.

    Uses torch F.cosine_similarity semantics (per-vector norm clamped to eps),
    matching the kernel.
    """
    x = x.astype(jnp.float32)
    logits = logits.astype(jnp.float32)
    num_classes = logits.shape[1]
    probs = jax.nn.softmax(logits, axis=1)
    max_prob = probs.max(axis=1)
    max_cls = probs.argmax(axis=1)
    norm = jnp.maximum(jnp.sqrt(jnp.sum(x * x, axis=1)), EPS)
    xn = x / norm[:, None]
    cos = xn @ xn.T
    x_agg = cos @ x + x
    onehot = jax.nn.one_hot(max_cls, num_classes, dtype=jnp.float32)
    accum = onehot.T @ (x_agg * max_prob[:, None])
    count = onehot.sum(axis=0)
    protos = jnp.where(count[:, None] > 0,
                       accum / jnp.where(count > 0, count, 1.0)[:, None],
                       0.0)
    inter = protos[None, :, :] - protos[:, None, :]
    return protos, inter


if __name__ == "__main__":
    # D = 512 matches the module's (num_classes, 512) prototype buffer; N = 64
    # matches the documented batch.  G = 2 exercises the parallel group axis.
    G, N, D, NUM_CLASSES = 2, 64, 512, 16

    key = jax.random.PRNGKey(0)
    kx, kl = jax.random.split(key)
    x = jax.random.normal(kx, (G, N, D), dtype=jnp.float32)
    class_logits = jax.random.normal(kl, (G, N, NUM_CLASSES), dtype=jnp.float32)

    # Buffers from __init__ (deterministic init). `prototypes` is fully
    # overwritten every forward and `step` is unused, so neither feeds the
    # kernel — kept only to mirror the module's parameter setup.
    step_buf = jnp.zeros((NUM_CLASSES,), jnp.int32)
    prototypes_buf = jnp.zeros((NUM_CLASSES, 512), jnp.float32)

    # Batched (grid) path.
    prototypes, inter_class_matrix = information_prototype_forward(
        x, class_logits)
    jax.block_until_ready((prototypes, inter_class_matrix))
    assert prototypes.shape == (G, NUM_CLASSES, D)
    assert inter_class_matrix.shape == (G, NUM_CLASSES, NUM_CLASSES, D)

    for gi in range(G):
        ref_p, ref_i = _reference(x[gi], class_logits[gi])
        # protos: bf16 MXU operands on the two (N,N,D) matmuls dominate error.
        assert jnp.allclose(prototypes[gi], ref_p, rtol=1e-2, atol=1e-2)
        # inter: additionally stored in bf16 (review: halve the dominant write).
        assert jnp.allclose(inter_class_matrix[gi].astype(jnp.float32), ref_i,
                            rtol=2e-2, atol=2e-2)

    # Single-group (module-shaped) entry point.
    p1, i1 = information_prototype_forward(x[0], class_logits[0])
    jax.block_until_ready((p1, i1))
    assert p1.shape == (NUM_CLASSES, D)
    assert i1.shape == (NUM_CLASSES, NUM_CLASSES, D)

    print("KERNEL_OK")
</pallas_src>

<mosaic_0001>
module attributes {stable_mosaic.version = 11 : i64} {
  func.func @_info_prototype_kernel(%arg0: i32, %arg1: memref<1x64x512xf32, #tpu.memory_space<vmem>>, %arg2: memref<1x64x16xf32, #tpu.memory_space<vmem>>, %arg3: memref<1x16x512xf32, #tpu.memory_space<vmem>>, %arg4: memref<1x16x16x512xbf16, #tpu.memory_space<vmem>>) attributes {dimension_semantics = [#tpu.dimension_semantics<parallel>], iteration_bounds = array<i64: 2>, scalar_prefetch = 0 : i64, scratch_operands = 0 : i64, tpu.core_type = #tpu.core_type<tc>, window_params = [{transform_indices = @transform_0, window_bounds = array<i64: 1, 64, 512>}, {transform_indices = @transform_1, window_bounds = array<i64: 1, 64, 16>}, {transform_indices = @transform_2, window_bounds = array<i64: 1, 16, 512>}, {transform_indices = @transform_3, window_bounds = array<i64: 1, 16, 16, 512>}]} {
    %c0 = arith.constant 0 : index
    %c0_0 = arith.constant 0 : index
    %c0_1 = arith.constant 0 : index
    %0 = vector.load %arg1[%c0, %c0_0, %c0_1] : memref<1x64x512xf32, #tpu.memory_space<vmem>>, vector<1x64x512xf32>
    %1 = vector.shape_cast %0 : vector<1x64x512xf32> to vector<64x512xf32>
    %c0_2 = arith.constant 0 : index
    %c0_3 = arith.constant 0 : index
    %c0_4 = arith.constant 0 : index
    %2 = vector.load %arg1[%c0_2, %c0_3, %c0_4] : memref<1x64x512xf32, #tpu.memory_space<vmem>>, vector<1x64x512xf32>
    %3 = vector.shape_cast %2 : vector<1x64x512xf32> to vector<64x512xf32>
    %4 = arith.truncf %3 : vector<64x512xf32> to vector<64x512xbf16>
    %c0_5 = arith.constant 0 : index
    %c0_6 = arith.constant 0 : index
    %c0_7 = arith.constant 0 : index
    %5 = vector.load %arg2[%c0_5, %c0_6, %c0_7] : memref<1x64x16xf32, #tpu.memory_space<vmem>>, vector<1x64x16xf32>
    %6 = vector.shape_cast %5 : vector<1x64x16xf32> to vector<64x16xf32>
    %cst = arith.constant dense<0xFF800000> : vector<64xf32>
    %7 = vector.multi_reduction <maximumf>, %6, %cst [1] : vector<64x16xf32> to vector<64xf32>
    %8 = vector.shape_cast %7 : vector<64xf32> to vector<64x1xf32>
    %9 = vector.broadcast %8 : vector<64x1xf32> to vector<64x16xf32>
    %10 = arith.subf %6, %9 : vector<64x16xf32>
    %11 = math.exp %10 : vector<64x16xf32>
    %cst_8 = arith.constant dense<0.000000e+00> : vector<64xf32>
    %12 = vector.multi_reduction <add>, %11, %cst_8 [1] : vector<64x16xf32> to vector<64xf32>
    %13 = vector.shape_cast %12 : vector<64xf32> to vector<64x1xf32>
    %cst_9 = arith.constant 1.000000e+00 : f32
    %14 = vector.broadcast %cst_9 : f32 to vector<64x1xf32>
    %15 = arith.divf %14, %13 : vector<64x1xf32>
    %16 = tpu.iota {dimensions = array<i32: 1>} : vector<64x16xi32>
    %17 = vector.broadcast %8 : vector<64x1xf32> to vector<64x16xf32>
    %18 = arith.cmpf oge, %6, %17 : vector<64x16xf32>
    %c16_i32 = arith.constant 16 : i32
    %19 = vector.broadcast %c16_i32 : i32 to vector<64x16xi32>
    %20 = arith.select %18, %16, %19 : vector<64x16xi1>, vector<64x16xi32>
    %cst_10 = arith.constant dense<2147483647> : vector<64xi32>
    %21 = vector.multi_reduction <minsi>, %20, %cst_10 [1] : vector<64x16xi32> to vector<64xi32>
    %22 = vector.shape_cast %21 : vector<64xi32> to vector<64x1xi32>
    %23 = arith.mulf %1, %1 : vector<64x512xf32>
    %cst_11 = arith.constant dense<0.000000e+00> : vector<64xf32>
    %24 = vector.multi_reduction <add>, %23, %cst_11 [1] : vector<64x512xf32> to vector<64xf32>
    %25 = vector.shape_cast %24 : vector<64xf32> to vector<64x1xf32>
    %cst_12 = arith.constant 1.000000e-16 : f32
    %26 = vector.broadcast %cst_12 : f32 to vector<64x1xf32>
    %27 = arith.maximumf %25, %26 : vector<64x1xf32>
    %28 = math.rsqrt %27 : vector<64x1xf32>
    %29 = vector.broadcast %28 : vector<64x1xf32> to vector<64x512xf32>
    %30 = arith.mulf %1, %29 : vector<64x512xf32>
    %31 = arith.truncf %30 : vector<64x512xf32> to vector<64x512xbf16>
    %cst_13 = arith.constant dense<0.000000e+00> : vector<64x64xf32>
    %32 = tpu.matmul %31, %31, %cst_13 {dimension_numbers = #tpu.dot_dimension_numbers<[1], [1], [0], [0], [0, 0, 1, 0], [], []>} : vector<64x512xbf16>, vector<64x512xbf16>, vector<64x64xf32> -> vector<64x64xf32>
    %33 = arith.truncf %32 : vector<64x64xf32> to vector<64x64xbf16>
    %cst_14 = arith.constant dense<0.000000e+00> : vector<64x512xf32>
    %34 = tpu.matmul %33, %4, %cst_14 {dimension_numbers = #tpu.dot_dimension_numbers<[1], [0], [0], [1], [0, 0, 1, 1], [], []>} : vector<64x64xbf16>, vector<64x512xbf16>, vector<64x512xf32> -> vector<64x512xf32>
    %35 = arith.addf %34, %1 : vector<64x512xf32>
    %36 = vector.broadcast %22 : vector<64x1xi32> to vector<64x16xi32>
    %37 = arith.cmpi eq, %16, %36 : vector<64x16xi32>
    %38 = arith.extui %37 : vector<64x16xi1> to vector<64x16xi32>
    %39 = arith.sitofp %38 : vector<64x16xi32> to vector<64x16xf32>
    %cst_15 = arith.constant dense<0.000000e+00> : vector<16xf32>
    %40 = vector.multi_reduction <add>, %39, %cst_15 [0] : vector<64x16xf32> to vector<16xf32>
    %41 = vector.shape_cast %40 : vector<16xf32> to vector<1x16xf32>
    %cst_16 = arith.constant 0.000000e+00 : f32
    %42 = vector.broadcast %cst_16 : f32 to vector<1x16xf32>
    %43 = arith.cmpf ogt, %41, %42 : vector<1x16xf32>
    %cst_17 = arith.constant 1.000000e+00 : f32
    %44 = vector.broadcast %cst_17 : f32 to vector<1x16xf32>
    %45 = arith.maximumf %41, %44 : vector<1x16xf32>
    %cst_18 = arith.constant 1.000000e+00 : f32
    %46 = vector.broadcast %cst_18 : f32 to vector<1x16xf32>
    %47 = arith.divf %46, %45 : vector<1x16xf32>
    %cst_19 = arith.constant 0.000000e+00 : f32
    %48 = vector.broadcast %cst_19 : f32 to vector<1x16xf32>
    %49 = arith.select %43, %47, %48 : vector<1x16xi1>, vector<1x16xf32>
    %50 = vector.broadcast %49 : vector<1x16xf32> to vector<64x16xf32>
    %51 = vector.broadcast %15 : vector<64x1xf32> to vector<64x16xf32>
    %52 = arith.mulf %50, %51 : vector<64x16xf32>
    %53 = arith.mulf %39, %52 : vector<64x16xf32>
    %cst_20 = arith.constant dense<0.000000e+00> : vector<16x512xf32>
    %54 = tpu.matmul %53, %35, %cst_20 {dimension_numbers = #tpu.dot_dimension_numbers<[0], [0], [1], [1], [0, 1, 1, 1], [], []>} : vector<64x16xf32>, vector<64x512xf32>, vector<16x512xf32> -> vector<16x512xf32>
    %c0_21 = arith.constant 0 : index
    %c0_22 = arith.constant 0 : index
    %c0_23 = arith.constant 0 : index
    %55 = vector.load %arg3[%c0_21, %c0_22, %c0_23] : memref<1x16x512xf32, #tpu.memory_space<vmem>>, vector<1x16x512xf32>
    %56 = vector.shape_cast %55 : vector<1x16x512xf32> to vector<16x512xf32>
    %57 = vector.shape_cast %54 : vector<16x512xf32> to vector<1x16x512xf32>
    tpu.vector_store %arg3[%c0_21, %c0_22, %c0_23], %57 {strides = array<i32>} : memref<1x16x512xf32, #tpu.memory_space<vmem>>, vector<1x16x512xf32>,
    %58 = vector.shape_cast %54 : vector<16x512xf32> to vector<1x16x512xf32>
    %59 = vector.shape_cast %54 : vector<16x512xf32> to vector<16x1x512xf32>
    %60 = vector.broadcast %58 : vector<1x16x512xf32> to vector<16x16x512xf32>
    %61 = vector.broadcast %59 : vector<16x1x512xf32> to vector<16x16x512xf32>
    %62 = arith.subf %60, %61 : vector<16x16x512xf32>
    %63 = arith.truncf %62 : vector<16x16x512xf32> to vector<16x16x512xbf16>
    %c0_24 = arith.constant 0 : index
    %c0_25 = arith.constant 0 : index
    %c0_26 = arith.constant 0 : index
    %c0_27 = arith.constant 0 : index
    %64 = vector.load %arg4[%c0_24, %c0_25, %c0_26, %c0_27] : memref<1x16x16x512xbf16, #tpu.memory_space<vmem>>, vector<1x16x16x512xbf16>
    %65 = vector.shape_cast %64 : vector<1x16x16x512xbf16> to vector<16x16x512xbf16>
    %66 = vector.shape_cast %63 : vector<16x16x512xbf16> to vector<1x16x16x512xbf16>
    tpu.vector_store %arg4[%c0_24, %c0_25, %c0_26, %c0_27], %66 {strides = array<i32>} : memref<1x16x16x512xbf16, #tpu.memory_space<vmem>>, vector<1x16x16x512xbf16>,
    return
  }
  func.func @transform_0(%arg0: i32) -> (i32, i32, i32) {
    %c0_i32 = arith.constant 0 : i32
    %c0_i32_0 = arith.constant 0 : i32
    %c0_i32_1 = arith.constant 0 : i32
    return %arg0, %c0_i32, %c0_i32_0 : i32, i32, i32
  }
  func.func @transform_1(%arg0: i32) -> (i32, i32, i32) {
    %c0_i32 = arith.constant 0 : i32
    %c0_i32_0 = arith.constant 0 : i32
    %c0_i32_1 = arith.constant 0 : i32
    return %arg0, %c0_i32, %c0_i32_0 : i32, i32, i32
  }
  func.func @transform_2(%arg0: i32) -> (i32, i32, i32) {
    %c0_i32 = arith.constant 0 : i32
    %c0_i32_0 = arith.constant 0 : i32
    %c0_i32_1 = arith.constant 0 : i32
    return %arg0, %c0_i32, %c0_i32_0 : i32, i32, i32
  }
  func.func @transform_3(%arg0: i32) -> (i32, i32, i32, i32) {
    %c0_i32 = arith.constant 0 : i32
    %c0_i32_0 = arith.constant 0 : i32
    %c0_i32_1 = arith.constant 0 : i32
    %c0_i32_2 = arith.constant 0 : i32
    return %arg0, %c0_i32, %c0_i32_0, %c0_i32_1 : i32, i32, i32, i32
  }
}

</mosaic_0001>

<bundles_post_ra>
// kernel: tpu_custom_call.1
= control target key start
LH: loop header
LB: loop body
LE: loop exit
PB: predicated region body
PF: predicated region fallthrough
CT: control target
= control target key end

     0   :  { %9 = vsyncpa [#allocation3], 0  ;;  %s4559_s0 = inlined_call_operand.hbm [shape: f32[2,64,512], index: 0, kind: input, shape index: {}]   ;;  %s4560_s1 = inlined_call_operand.vmem [shape: f32[2,64,16], index: 1, kind: input, shape index: {}]   ;;  %s4561_s2 = inlined_call_operand.hbm [shape: f32[2,16,512], index: 2, kind: output, shape index: {0}]   ;;  %s4562_s3 = inlined_call_operand.hbm [shape: bf16[2,16,16,512], index: 3, kind: output, shape index: {1}]  }
   0x1   :  { %11 = vsyncpa [#allocation3 + $0x1], 0 }
   0x2   :  { %12 = vsyncpa [#allocation4], 0 }
   0x3   :  { %14 = vsyncpa [#allocation4 + $0x1], 0 }
   0x4   :  { %15 = vsyncpa [#allocation7], 0 }
   0x5   :  { %17 = vsyncpa [#allocation7 + $0x1], 0  ;;  %s2861_s12 = smov 0   ;;  %s2863_s13 = smov 0  }
   0x6   :  { %s2865_s14 = smov 0   ;;  %s2867_s15 = smov 0  }
   0x7 LB: > { %s2882_s16 = sadd.s32 4294967295, %s2827_s15   ;;  %s2391_s17 = sadd.s32 4294967294, %s2827_s15   ;;  %s2827_s15 = sphi %s2867_s15, %s4804_s15   ;;  %s2823_s14 = sphi %s2865_s14, %s4803_s14   ;;  %s2819_s13 = sphi %s2863_s13, %s4802_s13   ;;  %s2815_s12 = sphi %s2861_s12, %s4801_s12  }
   0x8   : > { %s2886_s18 = sadd.s32 1, %s2827_s15   ;;  %s30_s19 = sadd.s32 1, %s2823_s14 }
   0x9   : > { %s27_s20 = ssub.s32 %s2827_s15, %s2886_s18  ;;  %p37_p0 = scmp.ne.s32.totalorder %s2823_s14, %s2819_s13 }
   0xa   : > { %p28_p1 = scmp.eq.s32.totalorder %s27_s20, 0  ;;  %p38_p2 = scmp.eq.s32.totalorder %s2827_s15, 0 }
   0xb   : > { %p43_p3 = scmp.ne.s32.totalorder %s2819_s13, %s2815_s12  ;;  %p44_p4 = scmp.eq.s32.totalorder %s2882_s16, 0 }
   0xc   : > { %s2898_s21 = scalar_select %p28_p1, %s2823_s14, %s30_s19  }
   0xd   : > { %p2900_p5 = por %p38_p2, %p37_p0  ;;  %p2904_p6 = por %p44_p4, %p43_p3 }
   0xe   : > { %p93_p7 = scmp.eq.s32.totalorder %s2882_s16, 1  ;;  %p99_p8 = scmp.eq.s32.totalorder %s2391_s17, 1 }
   0xf   : > { %s4617_s23 = scalar_select %p2904_p6, 1, 0 }
  0x10   : > { %p2580_p10 = scmp.lt.s32.totalorder %s2827_s15, 2  ;;  %p2911_p11 = por %p93_p7, %p37_p0 }
  0x11   : > { %p2915_p12 = por %p99_p8, %p43_p3  ;;  %s145_s26 = sand.u32 1, %s2823_s14  }
  0x12   : > { %s4618_s24 = scalar_select %p2911_p11, 1, 0 }
  0x13   : > { %s4619_s25 = scalar_select %p2915_p12, 1, 0 }
  0x14   : > { %s2495_s27 = sshll.u32 %s2827_s15, 12  ;;  %s2394_s28 = sshll.u32 %s145_s26, 8 }
  0x15   : > { %s2924_s4 = scalar_lea.hbm %s4559_s0, %s2495_s27  ;;  %s149_s5 = scalar_lea.vmem [#allocation2], %s2394_s28 }
  0x16   : > { %s156_s6 = sshll.u32 %s149_s5, 4  ;;  %p2928_p13 = pnand %p2580_p10, %p2900_p5  ;;  %s2932_s6 = int_to_ptr.vmem [resolvable:$true] %s156_s6 }
  0x17   : > { %s2934_s8 = scalar_lea.sflag [#allocation3], %s145_s26  ;;  %s2705_s9 = scalar_lea.hbm %s2924_s4, 4096 }
  0x18   : > { %p2706_p0 = scmp.ne.s32.totalorder %s2924_s4, %s2705_s9  ;;  %p2707_p1 = pneg %p2928_p13 }
  0x19   : > { %s2710_s17 = scalar_lea.hbm %s4559_s0, 8192  ;;  %p2711_p4 = scmp.lt.s32.totalorder %s2924_s4, %s4559_s0 }
  0x1a   : > { %p2708_p2 = pnand %p2707_p1, %p2706_p0  ;;  %p2712_p5 = scmp.lt.s32.totalorder %s2710_s17, %s2705_s9 }
  0x1c   : > { %p2709_p3 = pneg %p2708_p2  ;;  %p2713_p7 = por %p2712_p5, %p2711_p4 }
  0x1e   : > { %p2714_p8 = pnand %p2713_p7, %p2709_p3 }
  0x20   : > { %2717 = shalt.err (!%p2714_p8)
}
  0x21   : > { %s2718_s22 = scalar_lea.vmem %s2932_s6, 4096  ;;  %s2829_s26 = smov [#allocation2]  }
  0x22   : > { %p2719_p10 = scmp.ne.s32.totalorder %s2932_s6, %s2718_s22  ;;  %s2723_s27 = sshll.u32 %s2829_s26, 4  ;;  %s2724_s27 = int_to_ptr.vmem [resolvable:$false] %s2723_s27 }
  0x23   : > { %s2725_s28 = scalar_lea.vmem %s2724_s27, 8192  ;;  %p2726_p2 = scmp.lt.s32.totalorder %s2932_s6, %s2724_s27 }
  0x24   : > { %p2721_p9 = pnand %p2719_p10, %p2707_p1  ;;  %p2727_p12 = scmp.lt.s32.totalorder %s2725_s28, %s2718_s22 }
  0x26   : > { %p2722_p0 = pneg %p2721_p9  ;;  %p2728_p11 = por %p2727_p12, %p2726_p2 }
  0x28   : > { %p2729_p6 = pnand %p2728_p11, %p2722_p0 }
  0x2a   : > { %2732 = shalt.err (!%p2729_p6)
}
  0x2b   : > { %s2830_s29 = smov 512   ;;  %s2831_s30 = smov 32  }
  0x2c   : > { %2572 = dma.hbm_to_vmem [thread:$0]  (!%p2928_p13), %s2924_s4, 4096, %s2932_s6, %s2934_s8, %s2830_s29, %s2830_s29, %s2831_s30  }
  0x2d   : > { %p2397_p9 = scmp.ge.s32.totalorder %s2827_s15, 1  ;;  %p172_p1 = scmp.lt.s32.totalorder %s2827_s15, 3 }
  0x2f   : > { %p173_p3 = pnand %p2397_p9, %p172_p1 }
  0x31   : > { %176 = sbr.rel (%p173_p3) target bundleno = 1009 (0x3f1), region = 28 }
  0x36   : > { %s2958_s5 = sand.u32 1, %s2819_s13   ;;  %p4621_p6 = scmp.ne.s32.totalorder %s4617_s23, 0 }
  0x37   : > { %s2398_s9 = sshll.u32 %s2958_s5, 8  ;;  %s179_s10 = scalar_lea.sflag [#allocation3], %s2958_s5 }
  0x38   : > { %s2962_s11 = scalar_lea.vmem [#allocation2], %s2398_s9 }
  0x39   : > { %2802 = dma.done.wait (%p4621_p6), %s179_s10, 4096  }
  0x3a   : > { %2804 = vsyncadd (%p4621_p6), %s179_s10, 4294963200  ;;  %v2969_v0 = vld [vmem:[%s2962_s11 + $0xc0] sm:$0xff]  ;;  %v2972_v1 = vld [vmem:[%s2962_s11 + $0xc8] sm:$0xff]  ;;  %p215_p11 = scmp.lt.s32.totalorder %s2882_s16, 1  ;;  %vm277_vm0 = vcmask 130048   ;;  %s2399_s17 = sshll.u32 %s2958_s5, 6 }
  0x3b   : > { %v2975_v2 = vld [vmem:[%s2962_s11 + $0xd0] sm:$0xff]  ;;  %v2978_v3 = vld [vmem:[%s2962_s11 + $0xd8] sm:$0xff]  ;;  %v528_v4 = vmul.f32 %v2969_v0, %v2969_v0  ;;  %v529_v5 = vmul.f32 %v2972_v1, %v2972_v1  ;;  %v2987_v7 = vld [vmem:[%s2962_s11 + $0x80] sm:$0xff]  ;;  %s3596_s19 = scalar_lea.vmem [#allocation5], %s2399_s17  ;;  %s2561_s20 = sshll.u32 %s2882_s16, 10 }
  0x3c   : > { %v530_v6 = vmul.f32 %v2975_v2, %v2975_v2  ;;  %v2990_v8 = vld [vmem:[%s2962_s11 + $0x88] sm:$0xff]  ;;  %v531_v9 = vmul.f32 %v2978_v3, %v2978_v3  ;;  %v2995_v10 = vld [vmem:[%s2962_s11 + $0x90] sm:$0xff]  ;;  %v2998_v11 = vld [vmem:[%s2962_s11 + $0x98] sm:$0xff]  ;;  %v520_v12 = vmul.f32 %v2987_v7, %v2987_v7  ;;  %s3105_s23 = scalar_select %p215_p11, %s2882_s16, 1 }
  0x3d   : > { %v521_v13 = vmul.f32 %v2990_v8, %v2990_v8  ;;  %v3005_v14 = vld [vmem:[%s2962_s11 + $0xe0] sm:$0xff]  ;;  %v566_v15 = vadd.f32 %v529_v5, %v528_v4  ;;  %v522_v16 = vmul.f32 %v2995_v10, %v2995_v10  ;;  %v523_v17 = vmul.f32 %v2998_v11, %v2998_v11  ;;  %v3012_v18 = vld [vmem:[%s2962_s11 + $0xe8] sm:$0xff]  ;;  %v3015_v19 = vld [vmem:[%s2962_s11 + $0xf0] sm:$0xff]  ;;  %s2258_s22 = sshll.u32 %s3596_s19, 4  ;;  %s3627_s28 = scalar_lea.hbm %s4561_s2, %s2561_s20  ;;  %s3629_s22 = int_to_ptr.vmem [resolvable:$true] %s2258_s22 }
  0x3e   : > { %v3018_v20 = vld [vmem:[%s2962_s11 + $0xf8] sm:$0xff]  ;;  %v532_v21 = vmul.f32 %v3005_v14, %v3005_v14  ;;  %v533_v23 = vmul.f32 %v3012_v18, %v3012_v18  ;;  %v534_v24 = vmul.f32 %v3015_v19, %v3015_v19  ;;  %v3029_v26 = vld [vmem:[%s2962_s11 + $0xa0] sm:$0xff]  ;;  %v3032_v27 = vld [vmem:[%s2962_s11 + $0xa8] sm:$0xff]  ;;  %s2496_s4 = sshll.u32 %s3105_s23, 6  ;;  %s2240_s29 = scalar_lea.sflag [#allocation4], %s2958_s5 }
  0x3f   : > { %v556_v22 = vadd.f32 %v521_v13, %v520_v12  ;;  %v535_v25 = vmul.f32 %v3018_v20, %v3018_v20  ;;  %v3035_v28 = vld [vmem:[%s2962_s11 + $0xb0] sm:$0xff]  ;;  %v567_v29 = vadd.f32 %v566_v15, %v530_v6  ;;  %v3038_v30 = vld [vmem:[%s2962_s11 + $0xb8] sm:$0xff]  ;;  %v524_v31 = vmul.f32 %v3029_v26, %v3029_v26  ;;  %v3047_v34 = vld [vmem:[%s2962_s11 + $0x60] sm:$0xff]  ;;  %s219_s8 = scalar_lea.vmem %s4560_s1, %s2496_s4  ;;  %s2733_s30 = scalar_lea.vmem %s3629_s22, 1024 }
  0x40   : > { %v525_v32 = vmul.f32 %v3032_v27, %v3032_v27  ;;  %v526_v33 = vmul.f32 %v3035_v28, %v3035_v28  ;;  %v3050_v35 = vld [vmem:[%s2962_s11 + $0x68] sm:$0xff]  ;;  %v571_v37 = vadd.f32 %v533_v23, %v532_v21  ;;  %v527_v38 = vmul.f32 %v3038_v30, %v3038_v30  ;;  %v3056_v39 = vld [vmem:[%s2962_s11 + $0x70] sm:$0xff]  ;;  %v3059_v40 = vld [vmem:[%s2962_s11 + $0x78] sm:$0xff]  ;;  %p2734_p12 = scmp.ne.s32.totalorder %s3629_s22, %s2733_s30  ;;  %p4691_p13 = scmp.ne.s32.totalorder %s4618_s24, 0 }
  0x41   : > { %v557_v36 = vadd.f32 %v556_v22, %v522_v16  ;;  %v516_v41 = vmul.f32 %v3047_v34, %v3047_v34  ;;  %v3064_v42 = vld [vmem:[%s2962_s11 + $0x40] sm:$0xff]  ;;  %v568_v43 = vadd.f32 %v567_v29, %v531_v9  ;;  %v517_v45 = vmul.f32 %v3050_v35, %v3050_v35  ;;  %v3071_v47 = vld [vmem:[%s2962_s11 + $0x48] sm:$0xff]  ;;  %v3074_v48 = vld [vmem:[%s2962_s11 + $0x50] sm:$0xff]  ;;  %s2835_s9 = smov [#allocation5]  }
  0x42   : > { %v561_v44 = vadd.f32 %v525_v32, %v524_v31  ;;  %v518_v46 = vmul.f32 %v3056_v39, %v3056_v39  ;;  %v3077_v49 = vld [vmem:[%s2962_s11 + $0x58] sm:$0xff]  ;;  %v572_v51 = vadd.f32 %v571_v37, %v534_v24  ;;  %v519_v52 = vmul.f32 %v3059_v40, %v3059_v40  ;;  %v3084_v54 = vld [vmem:[%s2962_s11 + $0x20] sm:$0xff]  ;;  %v3087_v55 = vld [vmem:[%s2962_s11 + $0x28] sm:$0xff]  ;;  %p2735_p4 = pnand %p2734_p12, %p4691_p13  ;;  %s2737_s10 = sshll.u32 %s2835_s9, 4  ;;  %s2738_s10 = int_to_ptr.vmem [resolvable:$false] %s2737_s10 }
  0x43   : > { %v558_v50 = vadd.f32 %v557_v36, %v523_v17  ;;  %v512_v53 = vmul.f32 %v3064_v42, %v3064_v42  ;;  %v3090_v56 = vld [vmem:[%s2962_s11 + $0x30] sm:$0xff]  ;;  %569 = vadd.xlane.f32.xlu0 %v568_v43  ;;  %v551_v58 = vadd.f32 %v517_v45, %v516_v41  ;;  %v513_v59 = vmul.f32 %v3071_v47, %v3071_v47  ;;  %v3097_v61 = vld [vmem:[%s2962_s11] sm:$0xff]  ;;  %v3100_v62 = vld [vmem:[%s2962_s11 + $0x8] sm:$0xff]  ;;  %p2740_p7 = scmp.lt.s32.totalorder %s3629_s22, %s2738_s10 }
  0x44   : > { %v562_v57 = vadd.f32 %v561_v44, %v526_v33  ;;  %v514_v60 = vmul.f32 %v3074_v48, %v3074_v48  ;;  %v573_v63 = vadd.f32 %v572_v51, %v535_v25  ;;  %v515_v4 = vmul.f32 %v3077_v49, %v3077_v49  ;;  %v3110_v5 = vld [vmem:[%s2962_s11 + $0x38] sm:$0xff]  ;;  %v3117_v12 = vld [vmem:[%s2962_s11 + $0x10] sm:$0xff]  ;;  %v3138_v45 = vld [vmem:[%s219_s8] sm:$0xff]  ;;  %p2736_p5 = pneg %p2735_p4 }
  0x45   : > { %559 = vadd.xlane.f32.xlu1 %v558_v50  ;;  %v508_v6 = vmul.f32 %v3084_v54, %v3084_v54  ;;  %v509_v9 = vmul.f32 %v3087_v55, %v3087_v55  ;;  %v552_v15 = vadd.f32 %v551_v58, %v518_v46  ;;  %v546_v16 = vadd.f32 %v513_v59, %v512_v53  ;;  %v3122_v21 = vld [vmem:[%s2962_s11 + $0x18] sm:$0xff]  ;;  %v3140_v46 = vld [vmem:[%s219_s8 + $0x8] sm:$0xff]  ;;  %v3154_v59 = vld [vmem:[%s219_s8 + $0x20] sm:$0xff] }
  0x46   : > { %v563_v13 = vadd.f32 %v562_v57, %v527_v38  ;;  %v510_v17 = vmul.f32 %v3090_v56, %v3090_v56  ;;  %v504_v23 = vmul.f32 %v3097_v61, %v3097_v61  ;;  %v505_v24 = vmul.f32 %v3100_v62, %v3100_v62  ;;  %4622 = vst [vmem:[#allocation11_spill] sm:$0xff] %v3138_v45  ;;  %v3148_v53 = vld [vmem:[%s219_s8 + $0x18] sm:$0xff] }
  0x47   : > { %v541_v22 = vadd.f32 %v509_v9, %v508_v6  ;;  %574 = vadd.xlane.f32.xlu0 %v573_v63  ;;  %v547_v25 = vadd.f32 %v546_v16, %v514_v60  ;;  %v511_v29 = vmul.f32 %v3110_v5, %v3110_v5  ;;  %v506_v31 = vmul.f32 %v3117_v12, %v3117_v12  ;;  %v3156_v60 = vld [vmem:[%s219_s8 + $0x28] sm:$0xff]  ;;  %v3162_v6 = vld [vmem:[%s219_s8 + $0x30] sm:$0xff]  ;;  %v3164_v9 = vld [vmem:[%s219_s8 + $0x38] sm:$0xff] }
  0x48   : > { %v553_v32 = vadd.f32 %v552_v15, %v519_v52  ;;  %v507_v36 = vmul.f32 %v3122_v21, %v3122_v21  ;;  %v536_v37 = vadd.f32 %v505_v24, %v504_v23  ;;  %4623 = vst [vmem:[#allocation12_spill] sm:$0xff] %v3140_v46  ;;  %v278_v50 = vsel %vm277_vm0, %v3138_v45, -inf  ;;  %v3146_v52 = vld [vmem:[%s219_s8 + $0x10] sm:$0xff]  ;;  %4625 = vst [vmem:[#allocation14_spill] sm:$0xff] %v3148_v53 }
  0x49   : > { %564 = vadd.xlane.f32.xlu1 %v563_v13  ;;  %v542_v33 = vadd.f32 %v541_v22, %v510_v17  ;;  %v548_v38 = vadd.f32 %v547_v25, %v515_v4  ;;  %v281_v51 = vsel %vm277_vm0, %v3140_v46, -inf  ;;  %4624 = vst [vmem:[#allocation13_spill] sm:$0xff] %v3146_v52  ;;  %v284_v57 = vsel %vm277_vm0, %v3146_v52, -inf  ;;  %4626 = vst [vmem:[#allocation15_spill] sm:$0xff] %v3154_v59 }
  0x4a   : > { %v537_v41 = vadd.f32 %v536_v37, %v506_v31  ;;  %v287_v58 = vsel %vm277_vm0, %v3148_v53, -inf  ;;  %4627 = vst [vmem:[#allocation16_spill] sm:$0xff] %v3156_v60  ;;  %v290_v63 = vsel %vm277_vm0, %v3154_v59, -inf  ;;  %v293_v4 = vsel %vm277_vm0, %v3156_v60, -inf  ;;  %4628 = vst [vmem:[#allocation17_spill] sm:$0xff] %v3162_v6 }
  0x4b   : > { %549 = vadd.xlane.f32.xlu0 %v548_v38  ;;  %v543_v43 = vadd.f32 %v542_v33, %v511_v29  ;;  %4629 = vst [vmem:[#allocation18_spill] sm:$0xff] %v3164_v9  ;;  %v296_v13 = vsel %vm277_vm0, %v3162_v6, -inf  ;;  %v299_v15 = vsel %vm277_vm0, %v3164_v9, -inf  ;;  %v4565_v33 = vlaneseq }
  0x4c   : > { %v538_v44 = vadd.f32 %v537_v41, %v507_v36 }
  0x4d   : > { %554 = vadd.xlane.f32.xlu1 %v553_v32  ;;  %v3171_v41 = vand.u32 127, %v4565_v33 }
  0x4f   : > { %539 = vadd.xlane.f32.xlu0 %v538_v44  ;;  %4630 = vst [vmem:[#allocation19_spill] sm:$0xff] %v3171_v41 }
  0x51   : > { %544 = vadd.xlane.f32.xlu1 %v543_v43 }
  0x53   : > { %279 = vmax.xlane.f32.xlu0 %v278_v50 }
  0x55   : > { %282 = vmax.xlane.f32.xlu1 %v281_v51 }
  0x57   : > { %285 = vmax.xlane.f32.xlu0 %v284_v57 }
  0x59   : > { %288 = vmax.xlane.f32.xlu1 %v287_v58 }
  0x5b   : > { %291 = vmax.xlane.f32.xlu0 %v290_v63 }
  0x5d   : > { %294 = vmax.xlane.f32.xlu1 %v293_v4 }
  0x5f   : > { %297 = vmax.xlane.f32.xlu0 %v296_v13 }
  0x61   : > { %300 = vmax.xlane.f32.xlu1 %v299_v15 }
  0xcc   : > { %v570_v16 = vpop.xlane.xlu0 %569 }
  0xcd   : > { %v582_v23 = vmax.f32 %v570_v16, 1e-16 }
  0xce   : > { %v560_v17 = vpop.xlane.xlu1 %559 }
  0xcf   : > { %v580_v32 = vmax.f32 %v560_v17, 1e-16 }
  0xd0   : > { %v575_v22 = vpop.xlane.xlu0 %574 }
  0xd1   : > { %v583_v24 = vmax.f32 %v575_v22, 1e-16 }
  0xd2   : > { %v565_v25 = vpop.xlane.xlu1 %564 }
  0xd3   : > { %2623 = vrsqrt.f32 %v583_v24  ;;  %v581_v36 = vmax.f32 %v565_v25, 1e-16 }
  0xd4   : > { %v550_v29 = vpop.xlane.xlu0 %549  ;;  %2625 = vrsqrt.f32 %v582_v23 }
  0xd5   : > { %2627 = vrsqrt.f32 %v580_v32  ;;  %v578_v44 = vmax.f32 %v550_v29, 1e-16 }
  0xd6   : > { %v555_v31 = vpop.xlane.xlu1 %554  ;;  %2629 = vrsqrt.f32 %v581_v36 }
  0xd7   : > { %v579_v51 = vmax.f32 %v555_v31, 1e-16  ;;  %2631 = vrsqrt.f32 %v578_v44 }
  0xd8   : > { %v540_v37 = vpop.xlane.xlu0 %539 }
  0xd9   : > { %v576_v58 = vmax.f32 %v540_v37, 1e-16  ;;  %2633 = vrsqrt.f32 %v579_v51 }
  0xda   : > { %v545_v38 = vpop.xlane.xlu1 %544 }
  0xdb   : > { %v577_v13 = vmax.f32 %v545_v38, 1e-16  ;;  %2635 = vrsqrt.f32 %v576_v58 }
  0xdc   : > { %v3173_v43 = vpop.xlane.xlu0 %279 }
  0xdd   : > { %4631 = vst [vmem:[#allocation20_spill] sm:$0xff] %v3173_v43  ;;  %vm368_vm1 = vcmp.ge.f32.partialorder %v3138_v45, %v3173_v43  ;;  %2637 = vrsqrt.f32 %v577_v13 }
  0xde   : > { %v3175_v50 = vpop.xlane.xlu1 %282  ;;  %v376_v57 = vsel %vm368_vm1, %v3171_v41, 16 }
  0xdf   : > { %4632 = vst [vmem:[#allocation21_spill] sm:$0xff] %v3175_v50  ;;  %vm369_vm2 = vcmp.ge.f32.partialorder %v3140_v46, %v3175_v50  ;;  %v3184_v4 = vsel %vm277_vm0, %v376_v57, 2147483647 }
  0xe0   : > { %v377_v63 = vsel %vm369_vm2, %v3171_v41, 16  ;;  %v3186_v15 = vpop.xlane.xlu0 %285  ;;  %v386_v17 = vshra.s32 %v3184_v4, 16  ;;  %v2624_v22 = vpop.eup %2623  ;;  %vm774_vm2 = vcmask 523264  }
  0xe1   : > { %4633 = vst [vmem:[#allocation22_spill] sm:$0xff] %v3186_v15  ;;  %v3189_v16 = vsel %vm277_vm0, %v377_v63, 2147483647  ;;  %v2626_v25 = vpop.eup %2625  ;;  %vm370_vm4 = vcmp.ge.f32.partialorder %v3146_v52, %v3186_v15  ;;  %v621_v36 = vmul.f32 %v2624_v22, %v3012_v18  ;;  %v623_v37 = vmul.f32 %v2624_v22, %v3018_v20 }
  0xe2   : > { %v3192_v23 = vpop.xlane.xlu1 %288  ;;  %v401_v24 = vshra.s32 %v3189_v16, 16  ;;  %v3201_v31 = vcvt.s32.f32 %v386_v17  ;;  %v620_v38 = vmul.f32 %v2624_v22, %v3005_v14  ;;  %v617_v57 = vmul.f32 %v2626_v25, %v2972_v1  ;;  %v2628_v33 = vpop.eup %2627 }
  0xe3   : > { %4634 = vst [vmem:[#allocation23_spill] sm:$0xff] %v3192_v23  ;;  %vm371_vm3 = vcmp.ge.f32.partialorder %v3148_v53, %v3192_v23  ;;  %v619_v58 = vmul.f32 %v2626_v25, %v2978_v3  ;;  %v622_v63 = vmul.f32 %v2624_v22, %v3015_v19  ;;  %v378_v13 = vsel %vm370_vm4, %v3171_v41, 16 }
  0xe4   : > { %v3199_v29 = vcvt.s32.f32 %v401_v24  ;;  %4636 = vst [vmem:[#allocation25_spill] sm:$0xff] %v3201_v31  ;;  %v3203_v32 = vpop.xlane.xlu0 %291  ;;  %v379_v44 = vsel %vm371_vm3, %v3171_v41, 16  ;;  %389 = vmin.xlane.f32.xlu0 %v3201_v31  ;;  %v616_v17 = vmul.f32 %v2626_v25, %v2969_v0  ;;  %v618_v24 = vmul.f32 %v2626_v25, %v2975_v2  ;;  %v2630_v25 = vpop.eup %2629 }
  0xe5   : > { %4637 = vst [vmem:[#allocation26_spill] sm:$0xff] %v3203_v32  ;;  %v3221_v52 = vpack.c.bf16 %v621_v36, %v617_v57  ;;  %v3223_v15 = vpack.c.bf16 %v623_v37, %v619_v58  ;;  %vm372_vm6 = vcmp.ge.f32.partialorder %v3154_v59, %v3203_v32  ;;  %v3232_v23 = vsel %vm277_vm0, %v379_v44, 2147483647 }
  0xe6   : > { %4635 = vst [vmem:[#allocation24_spill] sm:$0xff] %v3199_v29  ;;  %404 = vmin.xlane.f32.xlu1 %v3199_v29  ;;  %v3210_v51 = vpop.xlane.xlu1 %294  ;;  %v3227_v53 = vpack.c.bf16 %v620_v38, %v616_v17  ;;  %v3229_v22 = vpack.c.bf16 %v622_v63, %v618_v24  ;;  %4639 = vst [vmem:[#allocation28_spill] sm:$0xff] %v3232_v23  ;;  %v431_v36 = vshra.s32 %v3232_v23, 16  ;;  %v3242_v57 = vsel %vm277_vm0, %v378_v13, 2147483647 }
  0xe7   : > { %4638 = vst [vmem:[#allocation27_spill] sm:$0xff] %v3210_v51  ;;  %vm373_vm5 = vcmp.ge.f32.partialorder %v3156_v60, %v3210_v51  ;;  %648 = vmatprep.subr.bf16.mxu0 %v3221_v52  ;;  %713 = vmatprep.subr.bf16.mxu1 %v3223_v15  ;;  %4642 = vst [vmem:[#allocation31_spill] sm:$0xff] %v3242_v57  ;;  %v416_v44 = vshra.s32 %v3242_v57, 16  ;;  %v609_v58 = vmul.f32 %v2628_v33, %v2990_v8 }
  0xe8   : > { %v3234_v31 = vpop.xlane.xlu0 %297  ;;  %v381_v38 = vsel %vm373_vm5, %v3171_v41, 16  ;;  %649 = vmatpush1.bf16.xpose.msra.mxu0 %v3227_v53  ;;  %714 = vmatpush1.bf16.xpose.msra.mxu1 %v3229_v22  ;;  %v380_v63 = vsel %vm372_vm6, %v3171_v41, 16  ;;  %v3255_v13 = vcvt.s32.f32 %v431_v36  ;;  %v613_v24 = vmul.f32 %v2630_v25, %v3032_v27  ;;  %v2632_v36 = vpop.eup %2631 }
  0xe9   : > { %4640 = vst [vmem:[#allocation29_spill] sm:$0xff] %v3234_v31  ;;  %vm374_vm8 = vcmp.ge.f32.partialorder %v3162_v6, %v3234_v31  ;;  %v3259_v17 = vcvt.s32.f32 %v416_v44  ;;  %v615_v60 = vmul.f32 %v2630_v25, %v3038_v30  ;;  %v3267_v59 = vsel %vm277_vm0, %v381_v38, 2147483647  ;;  %v2634_v32 = vpop.eup %2633 }
  0xea   : > { %v3239_v37 = vpop.xlane.xlu1 %300  ;;  %4643 = vst [vmem:[#allocation32_spill] sm:$0xff] %v3255_v13  ;;  %434 = vmin.xlane.f32.xlu1 %v3255_v13  ;;  %4645 = vst [vmem:[#allocation34_spill] sm:$0xff] %v3267_v59  ;;  %v382_v6 = vsel %vm374_vm8, %v3171_v41, 16  ;;  %v3271_v44 = vpack.c.bf16 %v613_v24, %v609_v58  ;;  %v461_v31 = vshra.s32 %v3267_v59, 16  ;;  %v3275_v13 = vsel %vm277_vm0, %v380_v63, 2147483647  ;;  %v2636_v29 = vpop.eup %2635 }
  0xeb   : > { %4641 = vst [vmem:[#allocation30_spill] sm:$0xff] %v3239_v37  ;;  %vm375_vm7 = vcmp.ge.f32.partialorder %v3164_v9, %v3239_v37  ;;  %4644 = vst [vmem:[#allocation33_spill] sm:$0xff] %v3259_v17  ;;  %v611_v37 = vmul.f32 %v2628_v33, %v2998_v11  ;;  %419 = vmin.xlane.f32.xlu0 %v3259_v17  ;;  %v446_v57 = vshra.s32 %v3275_v13, 16  ;;  %v3297_v59 = vsel %vm277_vm0, %v382_v6, 2147483647 }
  0xec   : > { %v383_v9 = vsel %vm375_vm7, %v3171_v41, 16  ;;  %4646 = vst [vmem:[#allocation35_spill] sm:$0xff] %v3275_v13  ;;  %v608_v38 = vmul.f32 %v2628_v33, %v2987_v7  ;;  %v612_v23 = vmul.f32 %v2630_v25, %v3029_v26  ;;  %650 = vmatprep.subr.bf16.mxu0 %v3271_v44  ;;  %v3283_v41 = vcvt.s32.f32 %v461_v31  ;;  %4650 = vst [vmem:[#allocation39_spill] sm:$0xff] %v3297_v59 }
  0xed   : > { %v3277_v51 = vpack.c.bf16 %v615_v60, %v611_v37  ;;  %v610_v58 = vmul.f32 %v2628_v33, %v2995_v10  ;;  %v614_v24 = vmul.f32 %v2630_v25, %v3035_v28  ;;  %v3288_v63 = vsel %vm277_vm0, %v383_v9, 2147483647  ;;  %v2638_v60 = vpop.eup %2637 }
  0xee   : > { %4647 = vst [vmem:[#allocation36_spill] sm:$0xff] %v3283_v41  ;;  %4648 = vst [vmem:[#allocation37_spill] sm:$0xff] %v3288_v63  ;;  %v3291_v37 = vcvt.s32.f32 %v446_v57  ;;  %v3293_v13 = vpack.c.bf16 %v612_v23, %v608_v38  ;;  %v491_v17 = vshra.s32 %v3288_v63, 16  ;;  %464 = vmin.xlane.f32.xlu1 %v3283_v41  ;;  %v476_v31 = vshra.s32 %v3297_v59, 16 }
  0xef   : > { %715 = vmatprep.subr.bf16.mxu1 %v3277_v51  ;;  %v3300_v33 = vpack.c.bf16 %v614_v24, %v610_v58  ;;  %v601_v9 = vmul.f32 %v2632_v36, %v3071_v47  ;;  %v605_v25 = vmul.f32 %v2634_v32, %v3050_v35  ;;  %v603_v57 = vmul.f32 %v2632_v36, %v3077_v49 }
  0xf0   : > { %4649 = vst [vmem:[#allocation38_spill] sm:$0xff] %v3291_v37  ;;  %449 = vmin.xlane.f32.xlu0 %v3291_v37  ;;  %651 = vmatpush1.bf16.xpose.msra.mxu0 %v3293_v13  ;;  %v3307_v23 = vcvt.s32.f32 %v491_v17  ;;  %v607_v6 = vmul.f32 %v2634_v32, %v3059_v40  ;;  %v600_v38 = vmul.f32 %v2632_v36, %v3064_v42  ;;  %v3313_v58 = vcvt.s32.f32 %v476_v31 }
  0xf1   : > { %716 = vmatpush1.bf16.xpose.msra.mxu1 %v3300_v33  ;;  %v629_v24 = vpack.c.bf16 %v605_v25, %v601_v9  ;;  %v604_v59 = vmul.f32 %v2634_v32, %v3047_v34  ;;  %v602_v41 = vmul.f32 %v2632_v36, %v3074_v48  ;;  %v606_v63 = vmul.f32 %v2634_v32, %v3056_v39 }
  0xf2   : > { %4651 = vst [vmem:[#allocation40_spill] sm:$0xff] %v3307_v23  ;;  %4652 = vst [vmem:[#allocation41_spill] sm:$0xff] %v3313_v58  ;;  %v631_v37 = vpack.c.bf16 %v607_v6, %v603_v57  ;;  %v593_v17 = vmul.f32 %v2636_v29, %v3100_v62  ;;  %v597_v45 = vmul.f32 %v2638_v60, %v3087_v55  ;;  %494 = vmin.xlane.f32.xlu1 %v3307_v23 }
  0xf3   : > { %652 = vmatprep.subr.bf16.mxu0 %v629_v24  ;;  %v595_v43 = vmul.f32 %v2636_v29, %v3122_v21  ;;  %v599_v31 = vmul.f32 %v2638_v60, %v3110_v5  ;;  %v628_v9 = vpack.c.bf16 %v604_v59, %v600_v38  ;;  %v630_v36 = vpack.c.bf16 %v606_v63, %v602_v41 }
  0xf4   : > { %479 = vmin.xlane.f32.xlu0 %v3313_v58  ;;  %717 = vmatprep.subr.bf16.mxu1 %v631_v37  ;;  %v625_v25 = vpack.c.bf16 %v597_v45, %v593_v17  ;;  %v592_v32 = vmul.f32 %v2636_v29, %v3097_v61  ;;  %v596_v6 = vmul.f32 %v2638_v60, %v3084_v54  ;;  %v4669_v17 = vld [vmem:[#allocation32_spill] sm:$0xff] }
  0xf5   : > { %v627_v57 = vpack.c.bf16 %v599_v31, %v595_v43  ;;  %v594_v23 = vmul.f32 %v2636_v29, %v3117_v12  ;;  %v598_v46 = vmul.f32 %v2638_v60, %v3090_v56  ;;  %v266_v45 = vpack.c.bf16 %v3012_v18, %v2972_v1  ;;  %v4664_v29 = vld [vmem:[#allocation31_spill] sm:$0xff] }
  0xf6   : > { %672 = vmatprep.mubr.bf16.mxu0 %v625_v25  ;;  %v624_v58 = vpack.c.bf16 %v596_v6, %v592_v32  ;;  %v268_v59 = vpack.c.bf16 %v3018_v20, %v2978_v3  ;;  %v265_v41 = vpack.c.bf16 %v3005_v14, %v2969_v0  ;;  %v262_v43 = vpack.c.bf16 %v3032_v27, %v2990_v8  ;;  %v4653_v27 = vld [vmem:[#allocation21_spill] sm:$0xff]  ;;  %v4672_v32 = vld [vmem:[#allocation35_spill] sm:$0xff] }
  0xf7   : > { %737 = vmatprep.mubr.bf16.mxu1 %v627_v57  ;;  %v626_v50 = vpack.c.bf16 %v598_v46, %v594_v23  ;;  %v267_v46 = vpack.c.bf16 %v3015_v19, %v2975_v2  ;;  %v263_v1 = vpack.c.bf16 %v3035_v28, %v2995_v10  ;;  %v261_v0 = vpack.c.bf16 %v3029_v26, %v2987_v7  ;;  %v4654_v28 = vld [vmem:[#allocation12_spill] sm:$0xff] }
  0xf8   : > { %653 = vmatpush1.bf16.xpose.msra.mxu0 %v628_v9  ;;  %v258_v2 = vpack.c.bf16 %v3050_v35, %v3071_v47  ;;  %v260_v3 = vpack.c.bf16 %v3059_v40, %v3077_v49  ;;  %v257_v7 = vpack.c.bf16 %v3047_v34, %v3064_v42  ;;  %v259_v8 = vpack.c.bf16 %v3056_v39, %v3074_v48  ;;  %v4655_v34 = vld [vmem:[#allocation20_spill] sm:$0xff]  ;;  %v4656_v35 = vld [vmem:[#allocation11_spill] sm:$0xff] }
  0xf9   : > { %718 = vmatpush1.bf16.xpose.msra.mxu1 %v630_v36  ;;  %654 = vmatprep.subr.bf16.mxu0 %v625_v25  ;;  %v254_v10 = vpack.c.bf16 %v3087_v55, %v3100_v62  ;;  %v253_v14 = vpack.c.bf16 %v3084_v54, %v3097_v61  ;;  %v255_v18 = vpack.c.bf16 %v3090_v56, %v3117_v12  ;;  %v2832_v19 = vmov 0   ;;  %v4657_v49 = vld [vmem:[#allocation24_spill] sm:$0xff]  ;;  %v4658_v54 = vld [vmem:[#allocation25_spill] sm:$0xff]  ;;  %v4659_v62 = vld [vmem:[#allocation23_spill] sm:$0xff] }
  0xfa   : > { %719 = vmatprep.subr.bf16.mxu1 %v627_v57  ;;  %v400_v20 = vand.u32 65535, %v3189_v16  ;;  %v385_v26 = vand.u32 65535, %v3184_v4  ;;  %v302_v39 = vsub.f32 %v4656_v35, %v4655_v34  ;;  %v4671_v57 = vld [vmem:[#allocation33_spill] sm:$0xff]  ;;  %v445_v6 = vand.u32 65535, %v4672_v32 }
  0xfc   : > { %v402_v47 = vcvt.s32.f32 %v400_v20  ;;  %v387_v48 = vcvt.s32.f32 %v385_v26  ;;  %v4679_v20 = vld [vmem:[#allocation39_spill] sm:$0xff] }
  0xfd   : > { %v475_v26 = vand.u32 65535, %v4679_v20 }
 0x100   : > { %655 = vmatpush1.bf16.xpose.msra.mxu0 %v624_v58 }
 0x101   : > { %720 = vmatpush1.bf16.xpose.msra.mxu1 %v626_v50  ;;  %795 = vmatprep.subr.bf16.mxu0 %v266_v45 }
 0x102   : > { %868 = vmatprep.subr.bf16.mxu1 %v268_v59  ;;  %v4673_v59 = vld [vmem:[#allocation30_spill] sm:$0xff] }
 0x107   : > { %673 = vmatmul.mubr.bf16.vlgmr.msra.gmra.mxu0 %v624_v58 }
 0x108   : > { %738 = vmatmul.mubr.bf16.vlgmr.msra.gmra.mxu1 %v626_v50  ;;  %680 = vmatprep.mubr.bf16.mxu0 %v629_v24  ;;  %v264_v50 = vpack.c.bf16 %v3038_v30, %v2998_v11  ;;  %v256_v11 = vpack.c.bf16 %v3110_v5, %v3122_v21  ;;  %v303_v30 = vsub.f32 %v4654_v28, %v4653_v27  ;;  %v4660_v5 = vld [vmem:[#allocation14_spill] sm:$0xff]  ;;  %v310_v21 = vmul.f32 1.442695, %v302_v39 }
 0x109   : > { %745 = vmatprep.mubr.bf16.mxu1 %v631_v37  ;;  %796 = vmatpush1.bf16.msra.mxu0 %v265_v41  ;;  %v305_v12 = vsub.f32 %v4660_v5, %v4659_v62  ;;  %v4667_v37 = vld [vmem:[#allocation26_spill] sm:$0xff] }
 0x10a   : > { %869 = vmatpush1.bf16.msra.mxu1 %v267_v46  ;;  %797 = vmatprep.subr.bf16.mxu0 %v262_v43  ;;  %v312_v61 = vmul.f32 1.442695, %v303_v30  ;;  %v4674_v41 = vld [vmem:[#allocation18_spill] sm:$0xff] }
 0x10b   : > { %870 = vmatprep.subr.bf16.mxu1 %v264_v50  ;;  %v309_v46 = vsub.f32 %v4674_v41, %v4673_v59  ;;  %v4680_v30 = vld [vmem:[#allocation38_spill] sm:$0xff] }
 0x10c   : > { %2639 = vpow2.f32 %v312_v61 }
 0x10d   : > { %798 = vmatpush1.bf16.msra.mxu0 %v261_v0  ;;  %2641 = vpow2.f32 %v310_v21  ;;  %v4676_v0 = vld [vmem:[#allocation17_spill] sm:$0xff]  ;;  %v324_v27 = vmul.f32 1.442695, %v309_v46 }
 0x10e   : > { %871 = vmatpush1.bf16.msra.mxu1 %v263_v1  ;;  %799 = vmatprep.subr.bf16.mxu0 %v258_v2  ;;  %v4675_v1 = vld [vmem:[#allocation29_spill] sm:$0xff] }
 0x10f   : > { %681 = vmatmul.mubr.bf16.gmra.mxu0 %v628_v9  ;;  %872 = vmatprep.subr.bf16.mxu1 %v260_v3  ;;  %v4670_v9 = vld [vmem:[#allocation34_spill] sm:$0xff]  ;;  %v308_v2 = vsub.f32 %v4676_v0, %v4675_v1 }
 0x110   : > { %746 = vmatmul.mubr.bf16.gmra.mxu1 %v630_v36  ;;  %688 = vmatprep.mubr.bf16.mxu0 %v3271_v44  ;;  %v4666_v44 = vld [vmem:[#allocation16_spill] sm:$0xff]  ;;  %v460_v25 = vand.u32 65535, %v4670_v9 }
 0x111   : > { %753 = vmatprep.mubr.bf16.mxu1 %v3277_v51  ;;  %800 = vmatpush1.bf16.msra.mxu0 %v257_v7  ;;  %v415_v51 = vand.u32 65535, %v4664_v29  ;;  %v322_v34 = vmul.f32 1.442695, %v308_v2 }
 0x112   : > { %873 = vmatpush1.bf16.msra.mxu1 %v259_v8  ;;  %801 = vmatprep.subr.bf16.mxu0 %v254_v10  ;;  %v462_v7 = vcvt.s32.f32 %v460_v25  ;;  %v4677_v8 = vld [vmem:[#allocation37_spill] sm:$0xff] }
 0x113   : > { %874 = vmatprep.subr.bf16.mxu1 %v256_v11  ;;  %v417_v31 = vcvt.s32.f32 %v415_v51  ;;  %v490_v10 = vand.u32 65535, %v4677_v8 }
 0x115   : > { %802 = vmatpush1.bf16.msra.mxu0 %v253_v14  ;;  %v4678_v14 = vld [vmem:[#allocation36_spill] sm:$0xff] }
 0x116   : > { %875 = vmatpush1.bf16.msra.mxu1 %v255_v18  ;;  %v447_v18 = vcvt.s32.f32 %v445_v6 }
 0x117   : > { %689 = vmatmul.mubr.bf16.gmra.mxu0 %v3293_v13  ;;  %v4665_v13 = vld [vmem:[#allocation27_spill] sm:$0xff] }
 0x118   : > { %754 = vmatmul.mubr.bf16.gmra.mxu1 %v3300_v33  ;;  %696 = vmatprep.mubr.bf16.mxu0 %v3221_v52  ;;  %v4661_v52 = vld [vmem:[#allocation22_spill] sm:$0xff]  ;;  %v307_v63 = vsub.f32 %v4666_v44, %v4665_v13  ;;  %v4668_v33 = vld [vmem:[#allocation15_spill] sm:$0xff] }
 0x119   : > { %761 = vmatprep.mubr.bf16.mxu1 %v3223_v15  ;;  %v4663_v15 = vld [vmem:[#allocation28_spill] sm:$0xff]  ;;  %v306_v23 = vsub.f32 %v4668_v33, %v4667_v37  ;;  %v2640_v61 = vpop.eup %2639 }
 0x11a   : > { %v430_v16 = vand.u32 65535, %v4663_v15  ;;  %v320_v45 = vmul.f32 1.442695, %v307_v63  ;;  %v2642_v5 = vpop.eup %2641 }
 0x11b   : > { %v318_v50 = vmul.f32 1.442695, %v306_v23 }
 0x11c   : > { %v432_v58 = vcvt.s32.f32 %v430_v16 }
 0x11f   : > { %697 = vmatmul.mubr.bf16.gmra.mxu0 %v3227_v53  ;;  %v4662_v53 = vld [vmem:[#allocation13_spill] sm:$0xff] }
 0x120   : > { %762 = vmatmul.mubr.bf16.gmra.mxu1 %v3229_v22  ;;  %819 = vmatprep.mubr.bf16.mxu0 %v2832_v19  ;;  %v304_v4 = vsub.f32 %v4662_v53, %v4661_v52  ;;  %v316_v22 = vmul.f32 1.442695, %v305_v12  ;;  %v329_v12 = vsel %vm277_vm0, %v2640_v61, 0.0  ;;  %v326_v52 = vsel %vm277_vm0, %v2642_v5, 0.0 }
 0x121   : > { %892 = vmatprep.mubr.bf16.mxu1 %v2832_v19 }
 0x122   : > { %v314_v60 = vmul.f32 1.442695, %v304_v4  ;;  %2643 = vpow2.f32 %v316_v22 }
 0x124   : > { %2645 = vpow2.f32 %v314_v60 }
 0x125   : > { %2647 = vpow2.f32 %v320_v45 }
 0x126   : > { %2649 = vpow2.f32 %v318_v50 }
 0x127   : > { %2651 = vpow2.f32 %v324_v27 }
 0x128   : > { %2653 = vpow2.f32 %v322_v34 }
 0x12f   : > { %v2644_v21 = vpop.eup %2643 }
 0x130   : > { %v335_v4 = vsel %vm277_vm0, %v2644_v21, 0.0 }
 0x131   : > { %v2646_v53 = vpop.eup %2645 }
 0x132   : > { %v2648_v15 = vpop.eup %2647  ;;  %v332_v16 = vsel %vm277_vm0, %v2646_v53, 0.0  ;;  %v2833_v53 = vmov 0.0  }
 0x133   : > { %v2650_v29 = vpop.eup %2649  ;;  %v341_v51 = vsel %vm277_vm0, %v2648_v15, 0.0 }
 0x134   : > { %v2652_v22 = vpop.eup %2651  ;;  %v338_v13 = vsel %vm277_vm0, %v2650_v29, 0.0 }
 0x135   : > { %v2654_v44 = vpop.eup %2653  ;;  %v347_v63 = vsel %vm277_vm0, %v2652_v22, 0.0 }
 0x136   : > { %v344_v60 = vsel %vm277_vm0, %v2654_v44, 0.0 }
 0x16d   : > { %v3378_v42 = vpop.xlane.xlu0 %389 }
 0x16e   : > { %vm391_vm10 = vcmp.eq.f32.partialorder %v4658_v54, %v3378_v42  ;;  %v477_v54 = vcvt.s32.f32 %v475_v26 }
 0x16f   : > { %v3376_v40 = vpop.xlane.xlu1 %404  ;;  %v392_v56 = vsel %vm391_vm10, %v387_v48, inf }
 0x170   : > { %vm406_vm9 = vcmp.eq.f32.partialorder %v4657_v49, %v3376_v40  ;;  %393 = vmin.xlane.f32.xlu0 %v392_v56  ;;  %v4681_v49 = vld [vmem:[#allocation40_spill] sm:$0xff]  ;;  %v4682_v56 = vld [vmem:[#allocation41_spill] sm:$0xff] }
 0x171   : > { %v407_v55 = vsel %vm406_vm9, %v402_v47, inf  ;;  %v492_v47 = vcvt.s32.f32 %v490_v10 }
 0x172   : > { %408 = vmin.xlane.f32.xlu1 %v407_v55 }
 0x173   : > { %v3394_v38 = vpop.xlane.xlu1 %434 }
 0x174   : > { %v3396_v24 = vpop.xlane.xlu0 %419  ;;  %vm436_vm11 = vcmp.eq.f32.partialorder %v4669_v17, %v3394_v38 }
 0x175   : > { %v437_v36 = vsel %vm436_vm11, %v432_v58, inf  ;;  %vm421_vm12 = vcmp.eq.f32.partialorder %v4671_v57, %v3396_v24 }
 0x176   : > { %438 = vmin.xlane.f32.xlu1 %v437_v36  ;;  %v422_v43 = vsel %vm421_vm12, %v417_v31, inf }
 0x177   : > { %423 = vmin.xlane.f32.xlu0 %v422_v43  ;;  %v3408_v3 = vpop.xlane.xlu1 %464 }
 0x178   : > { %vm466_vm13 = vcmp.eq.f32.partialorder %v4678_v14, %v3408_v3 }
 0x179   : > { %v3411_v11 = vpop.xlane.xlu0 %449  ;;  %v467_v28 = vsel %vm466_vm13, %v462_v7, inf }
 0x17a   : > { %vm451_vm14 = vcmp.eq.f32.partialorder %v4680_v30, %v3411_v11  ;;  %468 = vmin.xlane.f32.xlu1 %v467_v28 }
 0x17b   : > { %v452_v35 = vsel %vm451_vm14, %v447_v18, inf  ;;  %v3418_v39 = vpop.xlane.xlu1 %494 }
 0x17c   : > { %453 = vmin.xlane.f32.xlu0 %v452_v35  ;;  %vm496_vm15 = vcmp.eq.f32.partialorder %v4681_v49, %v3418_v39 }
 0x17d   : > { %v3420_v48 = vpop.xlane.xlu0 %479  ;;  %v497_v55 = vsel %vm496_vm15, %v492_v47, inf }
 0x17e   : > { %vm481_vm1 = vcmp.eq.f32.partialorder %v4682_v56, %v3420_v48  ;;  %498 = vmin.xlane.f32.xlu1 %v497_v55 }
 0x17f   : > { %v482_v62 = vsel %vm481_vm1, %v477_v54, inf }
 0x180   : > { %483 = vmin.xlane.f32.xlu0 %v482_v62 }
 0x182   : > { %330 = vadd.xlane.f32.xlu1 %v329_v12 }
 0x184   : > { %327 = vadd.xlane.f32.xlu0 %v326_v52 }
 0x186   : > { %336 = vadd.xlane.f32.xlu1 %v335_v4  ;;  %v411_v4 = vcvt.f32.s32 %v3376_v40 }
 0x188   : > { %333 = vadd.xlane.f32.xlu0 %v332_v16  ;;  %v412_v29 = vshll.u32 %v411_v4, 16 }
 0x18a   : > { %342 = vadd.xlane.f32.xlu1 %v341_v51 }
 0x18c   : > { %339 = vadd.xlane.f32.xlu0 %v338_v13 }
 0x18e   : > { %348 = vadd.xlane.f32.xlu1 %v347_v63 }
 0x190   : > { %345 = vadd.xlane.f32.xlu0 %v344_v60  ;;  %v441_v60 = vcvt.f32.s32 %v3394_v38 }
 0x1c7   : > { %v674_v37 = vpop.f32.mrf.mxu0 }
 0x1c8   : > { %v739_v33 = vpop.f32.mrf.mxu1 }
 0x1c9   : > { %v676_v23 = vpop.f32.mrf.mxu0  ;;  %v740_v9 = vadd.f32 %v739_v33, %v674_v37  ;;  %v4683_v37 = vld [vmem:[#allocation19_spill] sm:$0xff]  ;;  %v426_v33 = vcvt.f32.s32 %v3396_v24 }
 0x1ca   : > { %v741_v58 = vpop.f32.mrf.mxu1 }
 0x1cb   : > { %v677_v17 = vpop.f32.mrf.mxu0  ;;  %v427_v24 = vshll.u32 %v426_v33, 16 }
 0x1cc   : > { %v742_v31 = vpop.f32.mrf.mxu1 }
 0x1cd   : > { %v743_v25 = vadd.f32 %v742_v31, %v677_v17  ;;  %v679_v36 = vpop.f32.mrf.mxu0  ;;  %v442_v31 = vshll.u32 %v441_v60, 16 }
 0x1ce   : > { %v744_v57 = vpop.f32.mrf.mxu1 }
 0x1cf   : > { %v770_v32 = vpack.c.bf16 %v743_v25, %v740_v9  ;;  %v682_v6 = vpop.f32.mrf.mxu0  ;;  %v471_v9 = vcvt.f32.s32 %v3408_v3  ;;  %v456_v57 = vcvt.f32.s32 %v3411_v11  ;;  %v486_v3 = vcvt.f32.s32 %v3420_v48 }
 0x1d0   : > { %v747_v45 = vpop.f32.mrf.mxu1 }
 0x1d1   : > { %2403 = vmatmul.mubr.msk.bf16.vlgmr.msra.gmra.mxu0 %vm774_vm2, %v770_v32  ;;  %2407 = vmatmul.mubr.msk.bf16.vlgmr.msra.gmra.mxu1 %vm774_vm2, %v770_v32  ;;  %v684_v59 = vpop.f32.mrf.mxu0  ;;  %v748_v50 = vadd.f32 %v747_v45, %v682_v6 }
 0x1d2   : > { %v749_v41 = vpop.f32.mrf.mxu1  ;;  %829 = vmatprep.mubr.bf16.mxu0 %v2832_v19  ;;  %902 = vmatprep.mubr.bf16.mxu1 %v2832_v19  ;;  %v472_v59 = vshll.u32 %v471_v9, 16 }
 0x1d3   : > { %v685_v46 = vpop.f32.mrf.mxu0 }
 0x1d4   : > { %v750_v43 = vpop.f32.mrf.mxu1 }
 0x1d5   : > { %v751_v1 = vadd.f32 %v750_v43, %v685_v46  ;;  %v687_v0 = vpop.f32.mrf.mxu0  ;;  %v457_v46 = vshll.u32 %v456_v57, 16  ;;  %v501_v43 = vcvt.f32.s32 %v3418_v39 }
 0x1d6   : > { %v752_v2 = vpop.f32.mrf.mxu1 }
 0x1d7   : > { %v771_v7 = vpack.c.bf16 %v751_v1, %v748_v50  ;;  %v690_v8 = vpop.f32.mrf.mxu0 }
 0x1d8   : > { %v755_v10 = vpop.f32.mrf.mxu1 }
 0x1d9   : > { %2404 = vmatmul.mubr.msk.bf16.gmra.mxu0 %vm774_vm2, %v771_v7  ;;  %2408 = vmatmul.mubr.msk.bf16.gmra.mxu1 %vm774_vm2, %v771_v7  ;;  %v692_v14 = vpop.f32.mrf.mxu0  ;;  %v756_v27 = vadd.f32 %v755_v10, %v690_v8 }
 0x1da   : > { %v757_v18 = vpop.f32.mrf.mxu1  ;;  %839 = vmatprep.mubr.bf16.mxu0 %v2832_v19  ;;  %912 = vmatprep.mubr.bf16.mxu1 %v2832_v19 }
 0x1db   : > { %v693_v20 = vpop.f32.mrf.mxu0  ;;  %v502_v18 = vshll.u32 %v501_v43, 16 }
 0x1dc   : > { %v758_v26 = vpop.f32.mrf.mxu1 }
 0x1dd   : > { %v759_v28 = vadd.f32 %v758_v26, %v693_v20  ;;  %v695_v30 = vpop.f32.mrf.mxu0 }
 0x1de   : > { %v760_v34 = vpop.f32.mrf.mxu1 }
 0x1df   : > { %v772_v35 = vpack.c.bf16 %v759_v28, %v756_v27  ;;  %v698_v47 = vpop.f32.mrf.mxu0  ;;  %v487_v27 = vshll.u32 %v486_v3, 16 }
 0x1e0   : > { %v763_v49 = vpop.f32.mrf.mxu1 }
 0x1e1   : > { %2405 = vmatmul.mubr.msk.bf16.gmra.mxu0 %vm774_vm2, %v772_v35  ;;  %2409 = vmatmul.mubr.msk.bf16.gmra.mxu1 %vm774_vm2, %v772_v35  ;;  %v700_v54 = vpop.f32.mrf.mxu0  ;;  %v764_v62 = vadd.f32 %v763_v49, %v698_v47 }
 0x1e2   : > { %v765_v55 = vpop.f32.mrf.mxu1  ;;  %849 = vmatprep.mubr.bf16.mxu0 %v2832_v19  ;;  %922 = vmatprep.mubr.bf16.mxu1 %v2832_v19  ;;  %v396_v19 = vcvt.f32.s32 %v3378_v42 }
 0x1e3   : > { %v701_v56 = vpop.f32.mrf.mxu0 }
 0x1e4   : > { %v766_v61 = vpop.f32.mrf.mxu1  ;;  %v397_v51 = vshll.u32 %v396_v19, 16 }
 0x1e5   : > { %v767_v5 = vadd.f32 %v766_v61, %v701_v56  ;;  %v703_v12 = vpop.f32.mrf.mxu0 }
 0x1e6   : > { %v768_v21 = vpop.f32.mrf.mxu1 }
 0x1e7   : > { %v773_v52 = vpack.c.bf16 %v767_v5, %v764_v62 }
 0x1e9   : > { %2406 = vmatmul.mubr.msk.bf16.gmra.mxu0 %vm774_vm2, %v773_v52  ;;  %2410 = vmatmul.mubr.msk.bf16.gmra.mxu1 %vm774_vm2, %v773_v52 }
 0x1ea   : > { %1178 = vmatprep.mubr.f32.mxu1 %v2833_v53  ;;  %1101 = vmatprep.mubr.f32.mxu0 %v2833_v53 }
 0x1f9   : > { %v394_v16 = vpop.xlane.xlu0 %393 }
 0x1fa   : > { %v395_v13 = vcvt.f32.s32 %v394_v16 }
 0x1fb   : > { %v409_v15 = vpop.xlane.xlu1 %408 }
 0x1fc   : > { %v410_v22 = vcvt.f32.s32 %v409_v15  ;;  %v398_v63 = vadd.s32 %v397_v51, %v395_v13 }
 0x1fe   : > { %v413_v44 = vadd.s32 %v412_v29, %v410_v22  ;;  %vm933_vm4 = vcmp.eq.s32.totalorder %v4683_v37, %v398_v63 }
 0x1ff   : > { %v3460_v42 = vsel %vm933_vm4, 1.0, %v2833_v53  ;;  %v439_v17 = vpop.xlane.xlu1 %438 }
 0x200   : > { %vm934_vm3 = vcmp.eq.s32.totalorder %v4683_v37, %v413_v44  ;;  %v957_v23 = vsel %vm277_vm0, %v3460_v42, 0.0  ;;  %v440_v25 = vcvt.f32.s32 %v439_v17  ;;  %v424_v36 = vpop.xlane.xlu0 %423 }
 0x201   : > { %v3457_v40 = vsel %vm934_vm3, 1.0, %v2833_v53  ;;  %v425_v32 = vcvt.f32.s32 %v424_v36 }
 0x202   : > { %v958_v58 = vsel %vm277_vm0, %v3457_v40, 0.0  ;;  %v443_v6 = vadd.s32 %v442_v31, %v440_v25 }
 0x203   : > { %v959_v38 = vadd.f32 %v958_v58, %v957_v23  ;;  %v428_v45 = vadd.s32 %v427_v24, %v425_v32  ;;  %v469_v41 = vpop.xlane.xlu1 %468 }
 0x204   : > { %vm936_vm5 = vcmp.eq.s32.totalorder %v4683_v37, %v443_v6  ;;  %v470_v50 = vcvt.f32.s32 %v469_v41 }
 0x205   : > { %vm935_vm6 = vcmp.eq.s32.totalorder %v4683_v37, %v428_v45  ;;  %v454_v1 = vpop.xlane.xlu0 %453  ;;  %v3473_v0 = vsel %vm936_vm5, 1.0, %v2833_v53 }
 0x206   : > { %v3476_v11 = vsel %vm935_vm6, 1.0, %v2833_v53  ;;  %v455_v2 = vcvt.f32.s32 %v454_v1  ;;  %v473_v8 = vadd.s32 %v472_v59, %v470_v50  ;;  %v962_v20 = vsel %vm277_vm0, %v3473_v0, 0.0 }
 0x207   : > { %v960_v7 = vsel %vm277_vm0, %v3476_v11, 0.0  ;;  %v499_v14 = vpop.xlane.xlu1 %498 }
 0x208   : > { %v458_v10 = vadd.s32 %v457_v46, %v455_v2  ;;  %v961_v39 = vadd.f32 %v960_v7, %v959_v38  ;;  %vm938_vm7 = vcmp.eq.s32.totalorder %v4683_v37, %v473_v8  ;;  %v500_v48 = vcvt.f32.s32 %v499_v14 }
 0x209   : > { %v484_v26 = vpop.xlane.xlu0 %483  ;;  %v2416_v34 = vsel %vm938_vm7, 1.0, %v2833_v53 }
 0x20a   : > { %vm937_vm8 = vcmp.eq.s32.totalorder %v4683_v37, %v458_v10  ;;  %v485_v28 = vcvt.f32.s32 %v484_v26  ;;  %v963_v30 = vadd.f32 %v962_v20, %v961_v39  ;;  %v503_v47 = vadd.s32 %v502_v18, %v500_v48 }
 0x20b   : > { %v2415_v35 = vsel %vm937_vm8, 1.0, %v2833_v53  ;;  %v966_v56 = vsel %vm277_vm0, %v2416_v34, 0.0  ;;  %v331_v19 = vpop.xlane.xlu1 %330 }
 0x20c   : > { %v964_v49 = vsel %vm277_vm0, %v2415_v35, 0.0  ;;  %v488_v54 = vadd.s32 %v487_v27, %v485_v28  ;;  %vm940_vm9 = vcmp.eq.s32.totalorder %v4683_v37, %v503_v47  ;;  %2655 = vrcp.f32 %v331_v19 }
 0x20d   : > { %v965_v55 = vadd.f32 %v964_v49, %v963_v30  ;;  %v3491_v61 = vsel %vm940_vm9, 1.0, %v2833_v53  ;;  %v328_v16 = vpop.xlane.xlu0 %327 }
 0x20e   : > { %vm939_vm10 = vcmp.eq.s32.totalorder %v4683_v37, %v488_v54  ;;  %v970_v52 = vsel %vm277_vm0, %v3491_v61, 0.0  ;;  %2657 = vrcp.f32 %v328_v16 }
 0x20f   : > { %v2417_v62 = vsel %vm939_vm10, 1.0, %v2833_v53  ;;  %v967_v5 = vadd.f32 %v966_v56, %v965_v55  ;;  %v337_v22 = vpop.xlane.xlu1 %336 }
 0x210   : > { %v968_v12 = vsel %vm277_vm0, %v2417_v62, 0.0  ;;  %2659 = vrcp.f32 %v337_v22 }
 0x211   : > { %v969_v21 = vadd.f32 %v968_v12, %v967_v5  ;;  %v334_v44 = vpop.xlane.xlu0 %333 }
 0x212   : > { %2661 = vrcp.f32 %v334_v44 }
 0x213   : > { %v971_v4 = vadd.f32 %v970_v52, %v969_v21  ;;  %v343_v37 = vpop.xlane.xlu1 %342 }
 0x215   : > { %v972_v15 = vrot.slane %v971_v4, 4  ;;  %v340_v23 = vpop.xlane.xlu0 %339 }
 0x217   : > { %v973_v29 = vadd.f32 %v972_v15, %v971_v4  ;;  %v349_v8 = vpop.xlane.xlu1 %348 }
 0x219   : > { %v974_v51 = vrot.slane %v973_v29, 2  ;;  %v2656_v58 = vpop.eup %2655  ;;  %v346_v7 = vpop.xlane.xlu0 %345 }
 0x21b   : > { %v975_v13 = vadd.f32 %v974_v51, %v973_v29  ;;  %v2658_v17 = vpop.eup %2657 }
 0x21d   : > { %v976_v63 = vrot.slane %v975_v13, 1  ;;  %v2660_v38 = vpop.eup %2659 }
 0x21f   : > { %v977_v60 = vadd.f32 %v976_v63, %v975_v13  ;;  %v2662_v31 = vpop.eup %2661 }
 0x221   : > { %v979_v33 = vmax.f32 %v977_v60, 1.0  ;;  %vm978_vm0 = vcmp.gt.f32.partialorder %v977_v60, 0.0 }
 0x223   : > { %2663 = vrcp.f32 %v979_v33 }
 0x224   : > { %2665 = vrcp.f32 %v343_v37  ;;  %v2673_v37 = vld [vmem:[%s2962_s11 + $0xe8] sm:$0xff] }
 0x225   : > { %2667 = vrcp.f32 %v340_v23  ;;  %v2674_v23 = vld [vmem:[%s2962_s11 + $0xf8] sm:$0xff] }
 0x226   : > { %2669 = vrcp.f32 %v346_v7 }
 0x227   : > { %2671 = vrcp.f32 %v349_v8  ;;  %v2685_v8 = vld [vmem:[%s2962_s11 + $0x88] sm:$0xff] }
 0x230   : > { %v2664_v9 = vpop.eup %2663 }
 0x231   : > { %v2666_v25 = vpop.eup %2665  ;;  %v982_v36 = vsel %vm978_vm0, %v2664_v9, 0.0 }
 0x232   : > { %v2668_v24 = vpop.eup %2667  ;;  %v983_v57 = vmul.f32 %v2658_v17, %v982_v36  ;;  %v984_v32 = vmul.f32 %v2656_v58, %v982_v36  ;;  %v985_v6 = vmul.f32 %v2662_v31, %v982_v36  ;;  %v986_v45 = vmul.f32 %v2660_v38, %v982_v36  ;;  %v2675_v17 = vld [vmem:[%s2962_s11 + $0xe0] sm:$0xff]  ;;  %v2676_v31 = vld [vmem:[%s2962_s11 + $0xf0] sm:$0xff] }
 0x233   : > { %v987_v59 = vmul.f32 %v2668_v24, %v982_v36  ;;  %v988_v41 = vmul.f32 %v2666_v25, %v982_v36  ;;  %v2670_v10 = vpop.eup %2669  ;;  %v2677_v25 = vld [vmem:[%s2962_s11 + $0xc8] sm:$0xff]  ;;  %v2678_v24 = vld [vmem:[%s2962_s11 + $0xd8] sm:$0xff] }
 0x234   : > { %v991_v46 = vmul.f32 %v3460_v42, %v983_v57  ;;  %v992_v43 = vmul.f32 %v3457_v40, %v984_v32  ;;  %v993_v50 = vmul.f32 %v3476_v11, %v985_v6  ;;  %v994_v1 = vmul.f32 %v3473_v0, %v986_v45  ;;  %v2672_v42 = vpop.eup %2671  ;;  %v2679_v32 = vld [vmem:[%s2962_s11 + $0xc0] sm:$0xff]  ;;  %v2680_v45 = vld [vmem:[%s2962_s11 + $0xd0] sm:$0xff] }
 0x235   : > { %v995_v3 = vmul.f32 %v2415_v35, %v987_v59  ;;  %v996_v2 = vmul.f32 %v2416_v34, %v988_v41  ;;  %v989_v14 = vmul.f32 %v2670_v10, %v982_v36  ;;  %v990_v39 = vmul.f32 %v2672_v42, %v982_v36  ;;  %v2681_v41 = vld [vmem:[%s2962_s11 + $0xa8] sm:$0xff] }
 0x236   : > { %999 = vxpose.xlu0.b32.start [1/8] (short) (narrow) %v991_v46, 16 }
 0x237   : > { %v997_v40 = vmul.f32 %v2417_v62, %v989_v14  ;;  %v998_v0 = vmul.f32 %v3491_v61, %v990_v39  ;;  %v2686_v14 = vld [vmem:[%s2962_s11 + $0x98] sm:$0xff] }
 0x23a   : > { %1000 = vxpose.xlu0.b32.cont [2/8] (short) (narrow) %v992_v43, 16  ;;  %v2682_v43 = vld [vmem:[%s2962_s11 + $0xb8] sm:$0xff] }
 0x23e   : > { %1001 = vxpose.xlu0.b32.cont [3/8] (short) (narrow) %v993_v50, 16 }
 0x242   : > { %1002 = vxpose.xlu0.b32.cont [4/8] (short) (narrow) %v994_v1, 16  ;;  %v2683_v1 = vld [vmem:[%s2962_s11 + $0xa0] sm:$0xff] }
 0x246   : > { %1003 = vxpose.xlu0.b32.cont [5/8] (short) (narrow) %v995_v3, 16 }
 0x24a   : > { %1004 = vxpose.xlu0.b32.cont [6/8] (short) (narrow) %v996_v2, 16  ;;  %v2684_v2 = vld [vmem:[%s2962_s11 + $0xb0] sm:$0xff] }
 0x24e   : > { %1005 = vxpose.xlu0.b32.cont [7/8] (short) (narrow) %v997_v40, 16  ;;  %v2687_v40 = vld [vmem:[%s2962_s11 + $0x80] sm:$0xff] }
 0x252   : > { %1006 = vxpose.xlu0.b32.end [8/8] (short) (narrow) %v998_v0, 16  ;;  %v2688_v0 = vld [vmem:[%s2962_s11 + $0x90] sm:$0xff] }
 0x291   : > { %v3502_v11 = vpop.f32.mrf.mxu0  ;;  %v3504_v18 = vpop.f32.mrf.mxu1 }
 0x293   : > { %v3506_v20 = vpop.f32.mrf.mxu0  ;;  %v3508_v48 = vpop.f32.mrf.mxu1 }
 0x295   : > { %v3510_v26 = vpop.f32.mrf.mxu0  ;;  %v3512_v27 = vpop.f32.mrf.mxu1 }
 0x297   : > { %v3514_v28 = vpop.f32.mrf.mxu0  ;;  %v3516_v30 = vpop.f32.mrf.mxu1 }
 0x299   : > { %v3518_v34 = vpop.f32.mrf.mxu0  ;;  %v3520_v35 = vpop.f32.mrf.mxu1 }
 0x29b   : > { %v3522_v47 = vpop.f32.mrf.mxu0  ;;  %v3524_v49 = vpop.f32.mrf.mxu1 }
 0x29d   : > { %v3526_v54 = vpop.f32.mrf.mxu0  ;;  %v3528_v55 = vpop.f32.mrf.mxu1 }
 0x29f   : > { %v3530_v56 = vpop.f32.mrf.mxu0  ;;  %v3532_v61 = vpop.f32.mrf.mxu1 }
 0x2a1   : > { %v841_v62 = vpop.f32.mrf.mxu0  ;;  %v914_v5 = vpop.f32.mrf.mxu1 }
 0x2a2   : > { %v842_v39 = vadd.f32 %v2687_v40, %v841_v62  ;;  %v2692_v62 = vld [vmem:[%s2962_s11 + $0x70] sm:$0xff] }
 0x2a3   : > { %v843_v12 = vpop.f32.mrf.mxu0  ;;  %v916_v21 = vpop.f32.mrf.mxu1 }
 0x2a4   : > { %v844_v10 = vadd.f32 %v2685_v8, %v843_v12  ;;  %v917_v42 = vadd.f32 %v2686_v14, %v916_v21  ;;  %v2691_v21 = vld [vmem:[%s2962_s11 + $0x60] sm:$0xff] }
 0x2a5   : > { %v845_v52 = vpop.f32.mrf.mxu0  ;;  %v918_v4 = vpop.f32.mrf.mxu1 }
 0x2a6   : > { %v846_v3 = vadd.f32 %v2683_v1, %v845_v52  ;;  %v919_v7 = vadd.f32 %v2684_v2, %v918_v4  ;;  %v2689_v52 = vld [vmem:[%s2962_s11 + $0x68] sm:$0xff] }
 0x2a7   : > { %v847_v19 = vpop.f32.mrf.mxu0  ;;  %v920_v15 = vpop.f32.mrf.mxu1  ;;  %v838_v4 = vadd.f32 %v2689_v52, %v3530_v56 }
 0x2a8   : > { %v848_v46 = vadd.f32 %v2681_v41, %v847_v19  ;;  %v921_v50 = vadd.f32 %v2682_v43, %v920_v15  ;;  %v915_v19 = vadd.f32 %v2688_v0, %v914_v5  ;;  %v2690_v15 = vld [vmem:[%s2962_s11 + $0x78] sm:$0xff]  ;;  %v909_v5 = vadd.f32 %v2692_v62, %v3528_v55  ;;  %v2697_v55 = vld [vmem:[%s2962_s11 + $0x28] sm:$0xff] }
 0x2a9   : > { %v851_v16 = vpop.f32.mrf.mxu0  ;;  %v924_v29 = vpop.f32.mrf.mxu1  ;;  %v911_v12 = vadd.f32 %v2690_v15, %v3532_v61 }
 0x2aa   : > { %v852_v6 = vadd.f32 %v2679_v32, %v851_v16  ;;  %v925_v59 = vadd.f32 %v2680_v45, %v924_v29  ;;  %v836_v16 = vadd.f32 %v2691_v21, %v3526_v54  ;;  %v2693_v29 = vld [vmem:[%s2962_s11 + $0x48] sm:$0xff] }
 0x2ab   : > { %v853_v51 = vpop.f32.mrf.mxu0  ;;  %v926_v22 = vpop.f32.mrf.mxu1  ;;  %v834_v56 = vadd.f32 %v2693_v29, %v3522_v47  ;;  %v828_v47 = vadd.f32 %v2697_v55, %v3514_v28  ;;  %v2702_v28 = vld [vmem:[%s2962_s11 + $0x18] sm:$0xff] }
 0x2ac   : > { %v854_v36 = vadd.f32 %v2677_v25, %v853_v51  ;;  %v927_v57 = vadd.f32 %v2678_v24, %v926_v22  ;;  %v2694_v51 = vld [vmem:[%s2962_s11 + $0x58] sm:$0xff]  ;;  %v2695_v22 = vld [vmem:[%s2962_s11 + $0x40] sm:$0xff] }
 0x2ad   : > { %v855_v13 = vpop.f32.mrf.mxu0  ;;  %v928_v44 = vpop.f32.mrf.mxu1  ;;  %v907_v61 = vadd.f32 %v2694_v51, %v3524_v49  ;;  %v832_v54 = vadd.f32 %v2695_v22, %v3518_v34  ;;  %v2699_v49 = vld [vmem:[%s2962_s11 + $0x20] sm:$0xff] }
 0x2ae   : > { %v856_v38 = vadd.f32 %v2675_v17, %v855_v13  ;;  %v929_v9 = vadd.f32 %v2676_v31, %v928_v44  ;;  %v2696_v13 = vld [vmem:[%s2962_s11 + $0x50] sm:$0xff]  ;;  %v826_v34 = vadd.f32 %v2699_v49, %v3510_v26  ;;  %v897_v17 = vadd.f32 %v2702_v28, %v3508_v48 }
 0x2af   : > { %v857_v63 = vpop.f32.mrf.mxu0  ;;  %v930_v60 = vpop.f32.mrf.mxu1  ;;  %v905_v44 = vadd.f32 %v2696_v13, %v3520_v35  ;;  %v2704_v31 = vld [vmem:[%s2962_s11 + $0x10] sm:$0xff] }
 0x2b0   : > { %v858_v33 = vadd.f32 %v2673_v37, %v857_v63  ;;  %v931_v58 = vadd.f32 %v2674_v23, %v930_v60  ;;  %v2698_v63 = vld [vmem:[%s2962_s11 + $0x38] sm:$0xff]  ;;  %v2700_v37 = vld [vmem:[%s2962_s11 + $0x30] sm:$0xff]  ;;  %v2701_v23 = vld [vmem:[%s2962_s11 + $0x8] sm:$0xff]  ;;  %v895_v26 = vadd.f32 %v2704_v31, %v3504_v18 }
 0x2b1   : > { %v901_v60 = vadd.f32 %v2698_v63, %v3516_v30  ;;  %v899_v35 = vadd.f32 %v2700_v37, %v3512_v27  ;;  %v2703_v30 = vld [vmem:[%s2962_s11] sm:$0xff]  ;;  %v4684_v27 = vlaneseq  ;;  %s2739_s11 = scalar_lea.vmem %s2738_s10, 2048 }
 0x2b2   : > { %1053 = vmatprep.subr.mxu0 %v858_v33  ;;  %1130 = vmatprep.subr.mxu1 %v931_v58  ;;  %v1015_v33 = vpop.trf.xlu0  ;;  %v824_v58 = vadd.f32 %v2701_v23, %v3506_v20  ;;  %p2741_p8 = scmp.lt.s32.totalorder %s2739_s11, %s2733_s30 }
 0x2b3   : > { %1054 = vmatpush1.msra.mxu0 %v856_v38  ;;  %1131 = vmatpush1.msra.mxu1 %v929_v9  ;;  %v822_v38 = vadd.f32 %v2703_v30, %v3502_v11  ;;  %v2834_v11 = vmov 1966171168   ;;  %v1215_v9 = vshrl.u32 %v4684_v27, 7 }
 0x2b4   : > { %1055 = vmatprep.subr.mxu0 %v854_v36  ;;  %1132 = vmatprep.subr.mxu1 %v927_v57  ;;  %v1212_v18 = vunpack.c.l.s4 %v2834_v11  ;;  %p2742_p10 = por %p2741_p8, %p2740_p7 }
 0x2b5   : > { %1056 = vmatpush1.msra.mxu0 %v852_v6  ;;  %1133 = vmatpush1.msra.mxu1 %v925_v59  ;;  %v3639_v2 = vsub.s32 0, %v1215_v9  ;;  %v3643_v8 = vsub.s32 2, %v1215_v9 }
 0x2b6   : > { %1057 = vmatprep.subr.mxu0 %v848_v46  ;;  %1134 = vmatprep.subr.mxu1 %v921_v50  ;;  %v1016_v20 = vpop.trf.xlu0  ;;  %v1213_v48 = vunpack.c.0.s8 %v1212_v18  ;;  %p2743_p0 = pnand %p2742_p10, %p2736_p5 }
 0x2b7   : > { %1058 = vmatpush1.msra.mxu0 %v846_v3  ;;  %1135 = vmatpush1.msra.mxu1 %v919_v7  ;;  %4688 = vst [vmem:[#allocation11_spill] sm:$0xff] %v3639_v2  ;;  %v3641_v7 = vsub.s32 1, %v1215_v9 }
 0x2b8   : > { %1059 = vmatprep.subr.mxu0 %v844_v10  ;;  %1136 = vmatprep.subr.mxu1 %v917_v42  ;;  %v3594_v24 = vsub.s32 %v1213_v48, %v1215_v9  ;;  %v3645_v10 = vsub.s32 3, %v1215_v9 }
 0x2b9   : > { %1060 = vmatpush1.msra.mxu0 %v842_v39  ;;  %1137 = vmatpush1.msra.mxu1 %v915_v19  ;;  %4689 = vst [vmem:[#allocation24_spill] sm:$0xff] %v3641_v7 }
 0x2ba   : > { %1061 = vmatprep.subr.mxu0 %v838_v4  ;;  %1138 = vmatprep.subr.mxu1 %v911_v12 }
 0x2bb   : > { %1062 = vmatpush1.msra.mxu0 %v836_v16  ;;  %1139 = vmatpush1.msra.mxu1 %v909_v5 }
 0x2bc   : > { %1063 = vmatprep.subr.mxu0 %v834_v56  ;;  %1140 = vmatprep.subr.mxu1 %v907_v61 }
 0x2bd   : > { %1064 = vmatpush1.msra.mxu0 %v832_v54  ;;  %1141 = vmatpush1.msra.mxu1 %v905_v44 }
 0x2be   : > { %1065 = vmatprep.subr.mxu0 %v828_v47  ;;  %1142 = vmatprep.subr.mxu1 %v901_v60 }
 0x2bf   : > { %1066 = vmatpush1.msra.mxu0 %v826_v34  ;;  %1143 = vmatpush1.msra.mxu1 %v899_v35 }
 0x2c0   : > { %1067 = vmatprep.subr.mxu0 %v824_v58  ;;  %1144 = vmatprep.subr.mxu1 %v897_v17 }
 0x2c1   : > { %1145 = vmatpush1.msra.mxu1 %v895_v26  ;;  %1068 = vmatpush1.msra.mxu0 %v822_v38 }
 0x2c2   : > { %2419 = vmatmul.mubr.msk.f32.vlgmr.msra.gmra.mxu0 %vm774_vm2, %v1015_v33  ;;  %2421 = vmatmul.mubr.msk.f32.vlgmr.msra.gmra.mxu1 %vm774_vm2, %v1015_v33 }
 0x2c3   : > { %1184 = vmatprep.mubr.f32.mxu1 %v2833_v53  ;;  %1107 = vmatprep.mubr.f32.mxu0 %v2833_v53 }
 0x2c6   : > { %2420 = vmatmul.mubr.msk.f32.gmra.mxu0 %vm774_vm2, %v1016_v20  ;;  %2422 = vmatmul.mubr.msk.f32.gmra.mxu1 %vm774_vm2, %v1016_v20 }
 0x382   : > { %v3590_v25 = vpop.f32.mrf.mxu0  ;;  %v3592_v36 = vpop.f32.mrf.mxu1 }
 0x383   : > { %4685 = vst [vmem:[#allocation21_spill] sm:$0xff] %v3592_v36  ;;  %1191 = vst [vmem:[%s3596_s19] sm:$0xff] %v3590_v25 }
 0x384   : > { %1193 = vst [vmem:[%s3596_s19 + $0x10] sm:$0xff] %v3592_v36  ;;  %v3604_v53 = vpop.f32.mrf.mxu0  ;;  %v3606_v57 = vpop.f32.mrf.mxu1 }
 0x385   : > { %4686 = vst [vmem:[#allocation12_spill] sm:$0xff] %v3606_v57  ;;  %v1207_v32 = vcombine.low %v3590_v25, %v3604_v53  ;;  %v1208_v6 = vcombine.high %v3590_v25, %v3604_v53  ;;  %v1209_v45 = vcombine.low %v3592_v36, %v3606_v57  ;;  %v1210_v59 = vcombine.high %v3592_v36, %v3606_v57 }
 0x386   : > { %1192 = vst [vmem:[%s3596_s19 + $0x8] sm:$0xff] %v3604_v53  ;;  %1194 = vst [vmem:[%s3596_s19 + $0x18] sm:$0xff] %v3606_v57  ;;  %v3620_v41 = vpop.f32.mrf.mxu0  ;;  %v3622_v46 = vpop.f32.mrf.mxu1 }
 0x387   : > { %4687 = vst [vmem:[#allocation20_spill] sm:$0xff] %v3622_v46  ;;  %v1217_v43 = vrot.slane %v1207_v32, %v3594_v24  ;;  %v1224_v50 = vrot.slane %v1208_v6, %v3594_v24  ;;  %v1231_v1 = vrot.slane %v1209_v45, %v3594_v24  ;;  %v1238_v3 = vrot.slane %v1210_v59, %v3594_v24 }
 0x388   : > { %1195 = vst [vmem:[%s3596_s19 + $0x20] sm:$0xff] %v3620_v41  ;;  %1197 = vst [vmem:[%s3596_s19 + $0x30] sm:$0xff] %v3622_v46  ;;  %v3647_v14 = vpop.f32.mrf.mxu0  ;;  %v3649_v42 = vpop.f32.mrf.mxu1 }
 0x389   : > { %4690 = vst [vmem:[#allocation25_spill] sm:$0xff] %v3649_v42  ;;  %v1239_v40 = vcombine.low %v1217_v43, %v1231_v1  ;;  %v1240_v39 = vcombine.high %v1217_v43, %v1231_v1  ;;  %v1241_v0 = vcombine.low %v1224_v50, %v1238_v3  ;;  %v1242_v19 = vcombine.high %v1224_v50, %v1238_v3 }
 0x38a   : > { %1196 = vst [vmem:[%s3596_s19 + $0x28] sm:$0xff] %v3647_v14  ;;  %1198 = vst [vmem:[%s3596_s19 + $0x38] sm:$0xff] %v3649_v42  ;;  %v1275_v52 = vcombine.low %v3620_v41, %v3647_v14  ;;  %v1276_v4 = vcombine.high %v3620_v41, %v3647_v14  ;;  %v1277_v15 = vcombine.low %v3622_v46, %v3649_v42 }
 0x38b   : > { %v1278_v12 = vcombine.high %v3622_v46, %v3649_v42 }
 0x38c   : > { %2746 = shalt.err (!%p2743_p0)
}
 0x38d   : > { %s2747_s23 = scalar_lea.hbm %s3627_s28, 1024  ;;  %s2751_s7 = scalar_lea.hbm %s4561_s2, 2048 }
 0x38e   : > { %p2748_p2 = scmp.ne.s32.totalorder %s3627_s28, %s2747_s23  ;;  %p2752_p3 = scmp.lt.s32.totalorder %s3627_s28, %s4561_s2 }
 0x38f   : > { %p2753_p6 = scmp.lt.s32.totalorder %s2751_s7, %s2747_s23 }
 0x390   : > { %p2749_p9 = pnand %p2748_p2, %p4691_p13 }
 0x391   : > { %p2754_p11 = por %p2753_p6, %p2752_p3 }
 0x392   : > { %p2750_p1 = pneg %p2749_p9 }
 0x394   : > { %p2755_p12 = pnand %p2754_p11, %p2750_p1 }
 0x396   : > { %2758 = shalt.err (!%p2755_p12)
}
 0x397   : > { %s2836_s19 = smov 512   ;;  %s2837_s20 = smov 32   ;;  %v3687_v21 = vrot.slane %v1239_v40, %v3594_v24  ;;  %v3690_v16 = vrot.slane %v1241_v0, %v3594_v24  ;;  %v3693_v62 = vrot.slane %v1240_v39, %v3594_v24  ;;  %v3696_v5 = vrot.slane %v1242_v19, %v3594_v24 }
 0x398   : > { %2565 = dma.vmem_to_hbm [thread:$0]  (%p4691_p13), %s3629_s22, 1024, %s3627_s28, %s2240_s29, %s2836_s19, %s2836_s19, %s2837_s20   ;;  %v3699_v29 = vrot.slane %v1275_v52, %v3594_v24  ;;  %v3702_v56 = vrot.slane %v1276_v4, %v3594_v24  ;;  %v3705_v51 = vrot.slane %v1277_v15, %v3594_v24  ;;  %v3708_v61 = vrot.slane %v1278_v12, %v3594_v24 }
 0x399   : > { %v3712_v22 = vcombine.high %v3687_v21, %v3687_v21  ;;  %v3716_v54 = vcombine.high %v3690_v16, %v3690_v16  ;;  %v3720_v13 = vcombine.high %v3693_v62, %v3693_v62  ;;  %v3724_v44 = vcombine.high %v3696_v5, %v3696_v5  ;;  %s2400_s22 = sshll.u32 %s2958_s5, 9  ;;  %s2562_s27 = sshll.u32 %s2882_s16, 13 }
 0x39a   : > { %v1346_v55 = vrot.slane %v3687_v21, %v3639_v2  ;;  %v1350_v47 = vrot.slane %v3687_v21, %v3641_v7  ;;  %v1362_v63 = vrot.slane %v3693_v62, %v3639_v2  ;;  %v1366_v60 = vrot.slane %v3693_v62, %v3641_v7  ;;  %s3791_s26 = scalar_lea.vmem [#allocation6], %s2400_s22  ;;  %s4478_s30 = scalar_lea.hbm %s4562_s3, %s2562_s27 }
 0x39b   : > { %4692 = vst [vmem:[#allocation23_spill] sm:$0xff] %v3724_v44  ;;  %v1378_v49 = vrot.slane %v3712_v22, %v3639_v2  ;;  %v1382_v34 = vrot.slane %v3712_v22, %v3641_v7  ;;  %v1394_v37 = vrot.slane %v3720_v13, %v3639_v2  ;;  %v1398_v35 = vrot.slane %v3720_v13, %v3641_v7  ;;  %s2274_s28 = sshll.u32 %s3791_s26, 4  ;;  %s2245_s9 = scalar_lea.sflag [#allocation7], %s2958_s5  ;;  %s4480_s28 = int_to_ptr.vmem [resolvable:$true] %s2274_s28 }
 0x39c   : > { %v1410_v33 = vrot.slane %v3690_v16, %v3639_v2  ;;  %v1414_v23 = vrot.slane %v3690_v16, %v3641_v7  ;;  %v1426_v58 = vrot.slane %v3696_v5, %v3639_v2  ;;  %v1430_v28 = vrot.slane %v3696_v5, %v3641_v7  ;;  %s2759_s10 = scalar_lea.vmem %s4480_s28, 8192  ;;  %s2838_s11 = smov [#allocation6]  }
 0x39d   : > { %v1442_v17 = vrot.slane %v3716_v54, %v3639_v2  ;;  %v1446_v30 = vrot.slane %v3716_v54, %v3641_v7  ;;  %v1458_v38 = vrot.slane %v3724_v44, %v3639_v2  ;;  %v1462_v31 = vrot.slane %v3724_v44, %v3641_v7  ;;  %p2760_p4 = scmp.ne.s32.totalorder %s4480_s28, %s2759_s10  ;;  %s2763_s23 = sshll.u32 %s2838_s11, 4  ;;  %s2764_s23 = int_to_ptr.vmem [resolvable:$false] %s2763_s23 }
 0x39e   : > { %v1663_v26 = vsub.f32 %v3590_v25, %v1346_v55  ;;  %v1664_v20 = vsub.f32 %v3604_v53, %v1350_v47  ;;  %v1667_v11 = vsub.f32 %v3620_v41, %v1346_v55  ;;  %v1668_v18 = vsub.f32 %v3647_v14, %v1350_v47  ;;  %s2765_s4 = scalar_lea.vmem %s2764_s23, 16384  ;;  %p2766_p8 = scmp.lt.s32.totalorder %s4480_s28, %s2764_s23 }
 0x39f   : > { %v1671_v48 = vsub.f32 %v3590_v25, %v1362_v63  ;;  %v1672_v27 = vsub.f32 %v3604_v53, %v1366_v60  ;;  %v1675_v9 = vsub.f32 %v3620_v41, %v1362_v63  ;;  %v1676_v32 = vsub.f32 %v3647_v14, %v1366_v60  ;;  %p2761_p5 = pnand %p2760_p4, %p4691_p13  ;;  %p2767_p10 = scmp.lt.s32.totalorder %s2765_s4, %s2759_s10 }
 0x3a0   : > { %v1679_v6 = vsub.f32 %v3590_v25, %v1378_v49  ;;  %v1680_v45 = vsub.f32 %v3604_v53, %v1382_v34  ;;  %v1683_v59 = vsub.f32 %v3620_v41, %v1378_v49  ;;  %v1684_v43 = vsub.f32 %v3647_v14, %v1382_v34 }
 0x3a1   : > { %v1687_v50 = vsub.f32 %v3590_v25, %v1394_v37  ;;  %v1688_v1 = vsub.f32 %v3604_v53, %v1398_v35  ;;  %v1691_v3 = vsub.f32 %v3620_v41, %v1394_v37  ;;  %v1692_v40 = vsub.f32 %v3647_v14, %v1398_v35  ;;  %p2762_p7 = pneg %p2761_p5  ;;  %p2768_p0 = por %p2767_p10, %p2766_p8 }
 0x3a2   : > { %v1695_v39 = vsub.f32 %v3590_v25, %v1410_v33  ;;  %v1696_v0 = vsub.f32 %v3604_v53, %v1414_v23  ;;  %v1699_v19 = vsub.f32 %v3620_v41, %v1410_v33  ;;  %v1700_v52 = vsub.f32 %v3647_v14, %v1414_v23 }
 0x3a3   : > { %v1703_v4 = vsub.f32 %v3590_v25, %v1426_v58  ;;  %v1704_v15 = vsub.f32 %v3604_v53, %v1430_v28  ;;  %v1707_v12 = vsub.f32 %v3620_v41, %v1426_v58  ;;  %v1708_v55 = vsub.f32 %v3647_v14, %v1430_v28  ;;  %p2769_p2 = pnand %p2768_p0, %p2762_p7 }
 0x3a4   : > { %v1711_v47 = vsub.f32 %v3590_v25, %v1442_v17  ;;  %v1712_v63 = vsub.f32 %v3604_v53, %v1446_v30  ;;  %v1715_v60 = vsub.f32 %v3620_v41, %v1442_v17  ;;  %v1716_v49 = vsub.f32 %v3647_v14, %v1446_v30 }
 0x3a5   : > { %v1719_v34 = vsub.f32 %v3590_v25, %v1458_v38  ;;  %v1720_v37 = vsub.f32 %v3604_v53, %v1462_v31  ;;  %v1723_v35 = vsub.f32 %v3620_v41, %v1458_v38  ;;  %v1724_v33 = vsub.f32 %v3647_v14, %v1462_v31 }
 0x3a6   : > { %v2497_v23 = vpack.c.bf16 %v1664_v20, %v1663_v26  ;;  %v2499_v58 = vpack.c.bf16 %v1668_v18, %v1667_v11  ;;  %v2501_v42 = vpack.c.bf16 %v1672_v27, %v1671_v48  ;;  %v2503_v28 = vpack.c.bf16 %v1676_v32, %v1675_v9 }
 0x3a7   : > { %v2505_v46 = vpack.c.bf16 %v1680_v45, %v1679_v6  ;;  %v2507_v57 = vpack.c.bf16 %v1684_v43, %v1683_v59  ;;  %v2509_v36 = vpack.c.bf16 %v1688_v1, %v1687_v50  ;;  %v2511_v7 = vpack.c.bf16 %v1692_v40, %v1691_v3  ;;  %v4693_v50 = vld [vmem:[#allocation23_spill] sm:$0xff] }
 0x3a8   : > { %v2513_v2 = vpack.c.bf16 %v1696_v0, %v1695_v39  ;;  %v2515_v17 = vpack.c.bf16 %v1700_v52, %v1699_v19  ;;  %v2517_v44 = vpack.c.bf16 %v1704_v15, %v1703_v4  ;;  %v2519_v30 = vpack.c.bf16 %v1708_v55, %v1707_v12  ;;  %2175 = vst [vmem:[%s3791_s26] sm:$0xff] %v2497_v23  ;;  %v4694_v3 = vld [vmem:[#allocation11_spill] sm:$0xff] }
 0x3a9   : > { %2177 = vst [vmem:[%s3791_s26 + $0x10] sm:$0xff] %v2499_v58  ;;  %2179 = vst [vmem:[%s3791_s26 + $0x20] sm:$0xff] %v2501_v42  ;;  %v2521_v38 = vpack.c.bf16 %v1712_v63, %v1711_v47  ;;  %v2523_v31 = vpack.c.bf16 %v1716_v49, %v1715_v60  ;;  %v2525_v26 = vpack.c.bf16 %v1720_v37, %v1719_v34 }
 0x3aa   : > { %2181 = vst [vmem:[%s3791_s26 + $0x30] sm:$0xff] %v2503_v28  ;;  %v2527_v20 = vpack.c.bf16 %v1724_v33, %v1723_v35  ;;  %2183 = vst [vmem:[%s3791_s26 + $0x40] sm:$0xff] %v2505_v46  ;;  %v1307_v42 = vcombine.low %v3699_v29, %v3705_v51  ;;  %v1308_v11 = vcombine.high %v3699_v29, %v3705_v51 }
 0x3ab   : > { %2185 = vst [vmem:[%s3791_s26 + $0x50] sm:$0xff] %v2507_v57  ;;  %2187 = vst [vmem:[%s3791_s26 + $0x60] sm:$0xff] %v2509_v36  ;;  %v1309_v18 = vcombine.low %v3702_v56, %v3708_v61  ;;  %v1310_v48 = vcombine.high %v3702_v56, %v3708_v61  ;;  %v3819_v36 = vrot.slane %v3687_v21, %v3643_v8 }
 0x3ac   : > { %2189 = vst [vmem:[%s3791_s26 + $0x70] sm:$0xff] %v2511_v7  ;;  %2191 = vst [vmem:[%s3791_s26 + $0x80] sm:$0xff] %v2513_v2  ;;  %v3823_v57 = vrot.slane %v3687_v21, %v3645_v10  ;;  %v3827_v46 = vrot.slane %v3693_v62, %v3643_v8  ;;  %v3831_v2 = vrot.slane %v3693_v62, %v3645_v10 }
 0x3ad   : > { %2193 = vst [vmem:[%s3791_s26 + $0x90] sm:$0xff] %v2515_v17  ;;  %2195 = vst [vmem:[%s3791_s26 + $0xa0] sm:$0xff] %v2517_v44  ;;  %v1317_v7 = vrot.slane %v1307_v42, %v3594_v24  ;;  %v1324_v29 = vrot.slane %v1309_v18, %v3594_v24  ;;  %v1331_v56 = vrot.slane %v1308_v11, %v3594_v24 }
 0x3ae   : > { %2197 = vst [vmem:[%s3791_s26 + $0xb0] sm:$0xff] %v2519_v30  ;;  %2199 = vst [vmem:[%s3791_s26 + $0xc0] sm:$0xff] %v2521_v38  ;;  %v1338_v51 = vrot.slane %v1310_v48, %v3594_v24  ;;  %v3839_v21 = vrot.slane %v3712_v22, %v3643_v8  ;;  %v3843_v61 = vrot.slane %v3712_v22, %v3645_v10 }
 0x3af   : > { %2201 = vst [vmem:[%s3791_s26 + $0xd0] sm:$0xff] %v2523_v31  ;;  %2203 = vst [vmem:[%s3791_s26 + $0xe0] sm:$0xff] %v2525_v26  ;;  %v3847_v62 = vrot.slane %v3720_v13, %v3643_v8  ;;  %v3851_v44 = vrot.slane %v3720_v13, %v3645_v10  ;;  %v1339_v27 = vcombine.high %v1317_v7, %v1317_v7 }
 0x3b0   : > { %2205 = vst [vmem:[%s3791_s26 + $0xf0] sm:$0xff] %v2527_v20  ;;  %v1340_v9 = vcombine.high %v1324_v29, %v1324_v29  ;;  %v1341_v32 = vcombine.high %v1331_v56, %v1331_v56  ;;  %v1342_v24 = vcombine.high %v1338_v51, %v1338_v51  ;;  %v3855_v6 = vrot.slane %v3690_v16, %v3643_v8 }
 0x3b1   : > { %v3859_v22 = vrot.slane %v3690_v16, %v3645_v10  ;;  %v3863_v45 = vrot.slane %v3696_v5, %v3643_v8  ;;  %v3867_v13 = vrot.slane %v3696_v5, %v3645_v10  ;;  %v3871_v59 = vrot.slane %v3716_v54, %v3643_v8  ;;  %v4695_v5 = vld [vmem:[#allocation24_spill] sm:$0xff] }
 0x3b2   : > { %v3875_v43 = vrot.slane %v3716_v54, %v3645_v10  ;;  %v3879_v16 = vrot.slane %v4693_v50, %v3643_v8  ;;  %v3883_v1 = vrot.slane %v4693_v50, %v3645_v10  ;;  %v3886_v40 = vrot.slane %v1317_v7, %v4694_v3  ;;  %v4701_v50 = vld [vmem:[#allocation25_spill] sm:$0xff] }
 0x3b3   : > { %v3889_v39 = vrot.slane %v1317_v7, %v4695_v5  ;;  %v3892_v0 = vrot.slane %v1317_v7, %v3643_v8  ;;  %v3895_v54 = vrot.slane %v1317_v7, %v3645_v10  ;;  %v3898_v19 = vrot.slane %v1331_v56, %v4694_v3 }
 0x3b4   : > { %v3901_v52 = vrot.slane %v1331_v56, %v4695_v5  ;;  %v3904_v4 = vrot.slane %v1331_v56, %v3643_v8  ;;  %v3907_v15 = vrot.slane %v1331_v56, %v3645_v10  ;;  %v3910_v12 = vrot.slane %v1339_v27, %v4694_v3 }
 0x3b5   : > { %v3913_v55 = vrot.slane %v1339_v27, %v4695_v5  ;;  %v3916_v47 = vrot.slane %v1339_v27, %v3643_v8  ;;  %v3919_v63 = vrot.slane %v1339_v27, %v3645_v10  ;;  %v3922_v60 = vrot.slane %v1341_v32, %v4694_v3 }
 0x3b6   : > { %v3925_v49 = vrot.slane %v1341_v32, %v4695_v5  ;;  %v3928_v34 = vrot.slane %v1341_v32, %v3643_v8  ;;  %v3931_v37 = vrot.slane %v1341_v32, %v3645_v10  ;;  %v3934_v35 = vrot.slane %v1324_v29, %v4694_v3 }
 0x3b7   : > { %v3937_v33 = vrot.slane %v1324_v29, %v4695_v5  ;;  %v3940_v23 = vrot.slane %v1324_v29, %v3643_v8  ;;  %v3943_v58 = vrot.slane %v1324_v29, %v3645_v10  ;;  %v3946_v28 = vrot.slane %v1338_v51, %v4694_v3  ;;  %v4698_v29 = vld [vmem:[#allocation21_spill] sm:$0xff] }
 0x3b8   : > { %v3949_v17 = vrot.slane %v1338_v51, %v4695_v5  ;;  %v3952_v30 = vrot.slane %v1338_v51, %v3643_v8  ;;  %v3955_v38 = vrot.slane %v1338_v51, %v3645_v10  ;;  %v3958_v31 = vrot.slane %v1340_v9, %v4694_v3  ;;  %v4699_v51 = vld [vmem:[#allocation12_spill] sm:$0xff] }
 0x3b9   : > { %v3961_v26 = vrot.slane %v1340_v9, %v4695_v5  ;;  %v3964_v20 = vrot.slane %v1340_v9, %v3643_v8  ;;  %v3967_v42 = vrot.slane %v1340_v9, %v3645_v10  ;;  %v3970_v11 = vrot.slane %v1342_v24, %v4694_v3  ;;  %v4700_v9 = vld [vmem:[#allocation20_spill] sm:$0xff] }
 0x3ba   : > { %v3973_v18 = vrot.slane %v1342_v24, %v4695_v5  ;;  %v3976_v48 = vrot.slane %v1342_v24, %v3643_v8  ;;  %v3979_v7 = vrot.slane %v1342_v24, %v3645_v10  ;;  %v1665_v56 = vsub.f32 %v4698_v29, %v3819_v36 }
 0x3bb   : > { %v4702_v24 = vsub.f32 %v4699_v51, %v3823_v57  ;;  %v4703_v10 = vsub.f32 %v4700_v9, %v3819_v36  ;;  %v4704_v32 = vsub.f32 %v4701_v50, %v3823_v57  ;;  %v4705_v5 = vsub.f32 %v4698_v29, %v3827_v46 }
 0x3bc   : > { %4696 = vst [vmem:[#allocation14_spill] sm:$0xff] %v3976_v48  ;;  %4697 = vst [vmem:[#allocation22_spill] sm:$0xff] %v3979_v7  ;;  %v4706_v8 = vsub.f32 %v4699_v51, %v3831_v2  ;;  %v4707_v48 = vsub.f32 %v4700_v9, %v3827_v46  ;;  %v4709_v36 = vsub.f32 %v4698_v29, %v3839_v21 }
 0x3bd   : > { %v2498_v27 = vpack.c.bf16 %v4702_v24, %v1665_v56  ;;  %v2500_v3 = vpack.c.bf16 %v4704_v32, %v4703_v10  ;;  %v4708_v56 = vsub.f32 %v4701_v50, %v3831_v2  ;;  %v4710_v57 = vsub.f32 %v4699_v51, %v3843_v61 }
 0x3be   : > { %v2502_v7 = vpack.c.bf16 %v4706_v8, %v4705_v5  ;;  %v4711_v10 = vsub.f32 %v4700_v9, %v3839_v21  ;;  %v4712_v5 = vsub.f32 %v4701_v50, %v3843_v61  ;;  %v4713_v46 = vsub.f32 %v4698_v29, %v3847_v62 }
 0x3bf   : > { %v2504_v24 = vpack.c.bf16 %v4708_v56, %v4707_v48  ;;  %v2506_v32 = vpack.c.bf16 %v4710_v57, %v4709_v36  ;;  %v4714_v2 = vsub.f32 %v4699_v51, %v3851_v44  ;;  %v4715_v56 = vsub.f32 %v4700_v9, %v3847_v62  ;;  %2176 = vst [vmem:[%s3791_s26 + $0x8] sm:$0xff] %v2498_v27 }
 0x3c0   : > { %v2508_v8 = vpack.c.bf16 %v4712_v5, %v4711_v10  ;;  %v4716_v36 = vsub.f32 %v4701_v50, %v3851_v44  ;;  %v4717_v61 = vsub.f32 %v4698_v29, %v3855_v6  ;;  %v4718_v57 = vsub.f32 %v4699_v51, %v3859_v22  ;;  %2178 = vst [vmem:[%s3791_s26 + $0x18] sm:$0xff] %v2500_v3 }
 0x3c1   : > { %v2510_v48 = vpack.c.bf16 %v4714_v2, %v4713_v46  ;;  %v4719_v5 = vsub.f32 %v4700_v9, %v3855_v6  ;;  %v4720_v46 = vsub.f32 %v4701_v50, %v3859_v22  ;;  %v4721_v44 = vsub.f32 %v4698_v29, %v3863_v45  ;;  %2180 = vst [vmem:[%s3791_s26 + $0x28] sm:$0xff] %v2502_v7 }
 0x3c2   : > { %v2512_v21 = vpack.c.bf16 %v4716_v36, %v4715_v56  ;;  %v2514_v10 = vpack.c.bf16 %v4718_v57, %v4717_v61  ;;  %v4722_v2 = vsub.f32 %v4699_v51, %v3867_v13  ;;  %v4723_v36 = vsub.f32 %v4700_v9, %v3863_v45  ;;  %2182 = vst [vmem:[%s3791_s26 + $0x38] sm:$0xff] %v2504_v24 }
 0x3c3   : > { %v2516_v62 = vpack.c.bf16 %v4720_v46, %v4719_v5  ;;  %v4724_v61 = vsub.f32 %v4701_v50, %v3867_v13  ;;  %v4725_v6 = vsub.f32 %v4698_v29, %v3871_v59  ;;  %v4726_v22 = vsub.f32 %v4699_v51, %v3875_v43  ;;  %2184 = vst [vmem:[%s3791_s26 + $0x48] sm:$0xff] %v2506_v32 }
 0x3c4   : > { %v2518_v56 = vpack.c.bf16 %v4722_v2, %v4721_v44  ;;  %v4727_v45 = vsub.f32 %v4700_v9, %v3871_v59  ;;  %v4728_v13 = vsub.f32 %v4701_v50, %v3875_v43  ;;  %v4729_v7 = vsub.f32 %v4698_v29, %v3879_v16  ;;  %2186 = vst [vmem:[%s3791_s26 + $0x58] sm:$0xff] %v2508_v8 }
 0x3c5   : > { %v2520_v57 = vpack.c.bf16 %v4724_v61, %v4723_v36  ;;  %v2522_v5 = vpack.c.bf16 %v4726_v22, %v4725_v6  ;;  %v4730_v3 = vsub.f32 %v4699_v51, %v3883_v1  ;;  %v4731_v46 = vsub.f32 %v4700_v9, %v3879_v16  ;;  %2188 = vst [vmem:[%s3791_s26 + $0x68] sm:$0xff] %v2510_v48 }
 0x3c6   : > { %v2524_v27 = vpack.c.bf16 %v4728_v13, %v4727_v45  ;;  %v4732_v44 = vsub.f32 %v4701_v50, %v3883_v1  ;;  %2190 = vst [vmem:[%s3791_s26 + $0x78] sm:$0xff] %v2512_v21  ;;  %v4733_v59 = vsub.f32 %v3590_v25, %v3886_v40  ;;  %v4734_v43 = vsub.f32 %v3604_v53, %v3889_v39 }
 0x3c7   : > { %v2526_v24 = vpack.c.bf16 %v4730_v3, %v4729_v7  ;;  %v4735_v16 = vsub.f32 %v4698_v29, %v3892_v0  ;;  %v4736_v1 = vsub.f32 %v4699_v51, %v3895_v54  ;;  %v4737_v8 = vsub.f32 %v3620_v41, %v3886_v40  ;;  %2192 = vst [vmem:[%s3791_s26 + $0x88] sm:$0xff] %v2514_v10 }
 0x3c8   : > { %v2528_v2 = vpack.c.bf16 %v4732_v44, %v4731_v46  ;;  %v2529_v36 = vpack.c.bf16 %v4734_v43, %v4733_v59  ;;  %v4738_v48 = vsub.f32 %v3647_v14, %v3889_v39  ;;  %v4739_v61 = vsub.f32 %v4700_v9, %v3892_v0  ;;  %2194 = vst [vmem:[%s3791_s26 + $0x98] sm:$0xff] %v2516_v62 }
 0x3c9   : > { %v2530_v32 = vpack.c.bf16 %v4736_v1, %v4735_v16  ;;  %v4740_v6 = vsub.f32 %v4701_v50, %v3895_v54  ;;  %2196 = vst [vmem:[%s3791_s26 + $0xa8] sm:$0xff] %v2518_v56  ;;  %2198 = vst [vmem:[%s3791_s26 + $0xb8] sm:$0xff] %v2520_v57  ;;  %v4741_v40 = vsub.f32 %v3590_v25, %v3898_v19 }
 0x3ca   : > { %v2531_v21 = vpack.c.bf16 %v4738_v48, %v4737_v8  ;;  %v4742_v39 = vsub.f32 %v3604_v53, %v3901_v52  ;;  %v4743_v0 = vsub.f32 %v4698_v29, %v3904_v4  ;;  %v4744_v54 = vsub.f32 %v4699_v51, %v3907_v15  ;;  %2200 = vst [vmem:[%s3791_s26 + $0xc8] sm:$0xff] %v2522_v5 }
 0x3cb   : > { %v2532_v22 = vpack.c.bf16 %v4740_v6, %v4739_v61  ;;  %v4745_v62 = vsub.f32 %v3620_v41, %v3898_v19  ;;  %v4746_v56 = vsub.f32 %v3647_v14, %v3901_v52  ;;  %v4747_v13 = vsub.f32 %v4700_v9, %v3904_v4  ;;  %2202 = vst [vmem:[%s3791_s26 + $0xd8] sm:$0xff] %v2524_v27 }
 0x3cc   : > { %v2533_v45 = vpack.c.bf16 %v4742_v39, %v4741_v40  ;;  %v2534_v10 = vpack.c.bf16 %v4744_v54, %v4743_v0  ;;  %v4748_v7 = vsub.f32 %v4701_v50, %v3907_v15  ;;  %2204 = vst [vmem:[%s3791_s26 + $0xe8] sm:$0xff] %v2526_v24  ;;  %2206 = vst [vmem:[%s3791_s26 + $0xf8] sm:$0xff] %v2528_v2 }
 0x3cd   : > { %v2535_v57 = vpack.c.bf16 %v4746_v56, %v4745_v62  ;;  %v4749_v19 = vsub.f32 %v3590_v25, %v3910_v12  ;;  %v4750_v52 = vsub.f32 %v3604_v53, %v3913_v55  ;;  %v4751_v4 = vsub.f32 %v4698_v29, %v3916_v47  ;;  %2207 = vst [vmem:[%s3791_s26 + $0x100] sm:$0xff] %v2529_v36 }
 0x3ce   : > { %v2536_v3 = vpack.c.bf16 %v4748_v7, %v4747_v13  ;;  %v4752_v15 = vsub.f32 %v4699_v51, %v3919_v63  ;;  %v4753_v27 = vsub.f32 %v3620_v41, %v3910_v12  ;;  %v4754_v24 = vsub.f32 %v3647_v14, %v3913_v55  ;;  %2208 = vst [vmem:[%s3791_s26 + $0x108] sm:$0xff] %v2530_v32 }
 0x3cf   : > { %v2537_v46 = vpack.c.bf16 %v4750_v52, %v4749_v19  ;;  %v4755_v2 = vsub.f32 %v4700_v9, %v3916_v47  ;;  %v4756_v59 = vsub.f32 %v4701_v50, %v3919_v63  ;;  %2209 = vst [vmem:[%s3791_s26 + $0x110] sm:$0xff] %v2531_v21  ;;  %2210 = vst [vmem:[%s3791_s26 + $0x118] sm:$0xff] %v2532_v22 }
 0x3d0   : > { %v2538_v5 = vpack.c.bf16 %v4752_v15, %v4751_v4  ;;  %v2539_v44 = vpack.c.bf16 %v4754_v24, %v4753_v27  ;;  %v4757_v12 = vsub.f32 %v3590_v25, %v3922_v60  ;;  %v4758_v55 = vsub.f32 %v3604_v53, %v3925_v49  ;;  %2211 = vst [vmem:[%s3791_s26 + $0x120] sm:$0xff] %v2533_v45 }
 0x3d1   : > { %v2540_v43 = vpack.c.bf16 %v4756_v59, %v4755_v2  ;;  %v4759_v47 = vsub.f32 %v4698_v29, %v3928_v34  ;;  %v4760_v63 = vsub.f32 %v4699_v51, %v3931_v37  ;;  %v4761_v1 = vsub.f32 %v3620_v41, %v3922_v60  ;;  %2212 = vst [vmem:[%s3791_s26 + $0x128] sm:$0xff] %v2534_v10 }
 0x3d2   : > { %v2541_v16 = vpack.c.bf16 %v4758_v55, %v4757_v12  ;;  %v4762_v32 = vsub.f32 %v3647_v14, %v3925_v49  ;;  %v4763_v48 = vsub.f32 %v4700_v9, %v3928_v34  ;;  %v4764_v21 = vsub.f32 %v4701_v50, %v3931_v37  ;;  %2213 = vst [vmem:[%s3791_s26 + $0x130] sm:$0xff] %v2535_v57 }
 0x3d3   : > { %v2542_v36 = vpack.c.bf16 %v4760_v63, %v4759_v47  ;;  %2214 = vst [vmem:[%s3791_s26 + $0x138] sm:$0xff] %v2536_v3  ;;  %v4765_v60 = vsub.f32 %v3590_v25, %v3934_v35  ;;  %v4766_v49 = vsub.f32 %v3604_v53, %v3937_v33  ;;  %v4767_v37 = vsub.f32 %v4698_v29, %v3940_v23 }
 0x3d4   : > { %v2543_v8 = vpack.c.bf16 %v4762_v32, %v4761_v1  ;;  %v2544_v61 = vpack.c.bf16 %v4764_v21, %v4763_v48  ;;  %v4768_v6 = vsub.f32 %v4699_v51, %v3943_v58  ;;  %v4769_v40 = vsub.f32 %v3620_v41, %v3934_v35  ;;  %2215 = vst [vmem:[%s3791_s26 + $0x140] sm:$0xff] %v2537_v46 }
 0x3d5   : > { %v2545_v34 = vpack.c.bf16 %v4766_v49, %v4765_v60  ;;  %v4770_v39 = vsub.f32 %v3647_v14, %v3937_v33  ;;  %v4771_v0 = vsub.f32 %v4700_v9, %v3940_v23  ;;  %v4772_v54 = vsub.f32 %v4701_v50, %v3943_v58  ;;  %2216 = vst [vmem:[%s3791_s26 + $0x148] sm:$0xff] %v2538_v5 }
 0x3d6   : > { %v2546_v22 = vpack.c.bf16 %v4768_v6, %v4767_v37  ;;  %2217 = vst [vmem:[%s3791_s26 + $0x150] sm:$0xff] %v2539_v44  ;;  %2218 = vst [vmem:[%s3791_s26 + $0x158] sm:$0xff] %v2540_v43  ;;  %v4773_v35 = vsub.f32 %v3590_v25, %v3946_v28  ;;  %v4774_v33 = vsub.f32 %v3604_v53, %v3949_v17  ;;  %v4793_v43 = vld [vmem:[#allocation22_spill] sm:$0xff] }
 0x3d7   : > { %v2547_v45 = vpack.c.bf16 %v4770_v39, %v4769_v40  ;;  %v2548_v10 = vpack.c.bf16 %v4772_v54, %v4771_v0  ;;  %v4775_v23 = vsub.f32 %v4698_v29, %v3952_v30  ;;  %v4776_v58 = vsub.f32 %v4699_v51, %v3955_v38  ;;  %2219 = vst [vmem:[%s3791_s26 + $0x160] sm:$0xff] %v2541_v16 }
 0x3d8   : > { %v2549_v62 = vpack.c.bf16 %v4774_v33, %v4773_v35  ;;  %v4777_v57 = vsub.f32 %v3620_v41, %v3946_v28  ;;  %v4778_v13 = vsub.f32 %v3647_v14, %v3949_v17  ;;  %v4779_v3 = vsub.f32 %v4700_v9, %v3952_v30  ;;  %2220 = vst [vmem:[%s3791_s26 + $0x168] sm:$0xff] %v2542_v36 }
 0x3d9   : > { %v2550_v56 = vpack.c.bf16 %v4776_v58, %v4775_v23  ;;  %v4780_v19 = vsub.f32 %v4701_v50, %v3955_v38  ;;  %2221 = vst [vmem:[%s3791_s26 + $0x170] sm:$0xff] %v2543_v8  ;;  %2222 = vst [vmem:[%s3791_s26 + $0x178] sm:$0xff] %v2544_v61  ;;  %v4781_v46 = vsub.f32 %v3590_v25, %v3958_v31 }
 0x3da   : > { %v2551_v7 = vpack.c.bf16 %v4778_v13, %v4777_v57  ;;  %v4782_v28 = vsub.f32 %v3604_v53, %v3961_v26  ;;  %v4783_v30 = vsub.f32 %v4698_v29, %v3964_v20  ;;  %v4784_v38 = vsub.f32 %v4699_v51, %v3967_v42  ;;  %2223 = vst [vmem:[%s3791_s26 + $0x180] sm:$0xff] %v2545_v34 }
 0x3db   : > { %v2552_v52 = vpack.c.bf16 %v4780_v19, %v4779_v3  ;;  %v4785_v15 = vsub.f32 %v3620_v41, %v3958_v31  ;;  %v4786_v5 = vsub.f32 %v3647_v14, %v3961_v26  ;;  %v4787_v24 = vsub.f32 %v4700_v9, %v3964_v20  ;;  %2224 = vst [vmem:[%s3791_s26 + $0x188] sm:$0xff] %v2546_v22 }
 0x3dc   : > { %v2553_v17 = vpack.c.bf16 %v4782_v28, %v4781_v46  ;;  %v2554_v4 = vpack.c.bf16 %v4784_v38, %v4783_v30  ;;  %v4788_v44 = vsub.f32 %v4701_v50, %v3967_v42  ;;  %2225 = vst [vmem:[%s3791_s26 + $0x190] sm:$0xff] %v2547_v45  ;;  %2226 = vst [vmem:[%s3791_s26 + $0x198] sm:$0xff] %v2548_v10  ;;  %v4791_v42 = vld [vmem:[#allocation14_spill] sm:$0xff] }
 0x3dd   : > { %v2555_v27 = vpack.c.bf16 %v4786_v5, %v4785_v15  ;;  %v4789_v31 = vsub.f32 %v3590_v25, %v3970_v11  ;;  %v4790_v26 = vsub.f32 %v3604_v53, %v3973_v18  ;;  %v4792_v59 = vsub.f32 %v4698_v29, %v4791_v42  ;;  %2227 = vst [vmem:[%s3791_s26 + $0x1a0] sm:$0xff] %v2549_v62 }
 0x3de   : > { %v2556_v2 = vpack.c.bf16 %v4788_v44, %v4787_v24  ;;  %v4794_v12 = vsub.f32 %v4699_v51, %v4793_v43  ;;  %v4795_v16 = vsub.f32 %v3620_v41, %v3970_v11  ;;  %v4796_v47 = vsub.f32 %v3647_v14, %v3973_v18  ;;  %2228 = vst [vmem:[%s3791_s26 + $0x1a8] sm:$0xff] %v2550_v56 }
 0x3df   : > { %v2557_v20 = vpack.c.bf16 %v4790_v26, %v4789_v31  ;;  %v4797_v53 = vsub.f32 %v4700_v9, %v4791_v42  ;;  %v4798_v63 = vsub.f32 %v4701_v50, %v4793_v43  ;;  %2229 = vst [vmem:[%s3791_s26 + $0x1b0] sm:$0xff] %v2551_v7  ;;  %2230 = vst [vmem:[%s3791_s26 + $0x1b8] sm:$0xff] %v2552_v52 }
 0x3e0   : > { %v2558_v55 = vpack.c.bf16 %v4794_v12, %v4792_v59  ;;  %v2559_v25 = vpack.c.bf16 %v4796_v47, %v4795_v16  ;;  %2231 = vst [vmem:[%s3791_s26 + $0x1c0] sm:$0xff] %v2553_v17  ;;  %2232 = vst [vmem:[%s3791_s26 + $0x1c8] sm:$0xff] %v2554_v4 }
 0x3e1   : > { %v2560_v29 = vpack.c.bf16 %v4798_v63, %v4797_v53  ;;  %2233 = vst [vmem:[%s3791_s26 + $0x1d0] sm:$0xff] %v2555_v27  ;;  %2234 = vst [vmem:[%s3791_s26 + $0x1d8] sm:$0xff] %v2556_v2 }
 0x3e2   : > { %2235 = vst [vmem:[%s3791_s26 + $0x1e0] sm:$0xff] %v2557_v20  ;;  %2236 = vst [vmem:[%s3791_s26 + $0x1e8] sm:$0xff] %v2558_v55 }
 0x3e3   : > { %2237 = vst [vmem:[%s3791_s26 + $0x1f0] sm:$0xff] %v2559_v25  ;;  %2238 = vst [vmem:[%s3791_s26 + $0x1f8] sm:$0xff] %v2560_v29 }
 0x3e4   : > { %2772 = shalt.err (!%p2769_p2)
}
 0x3e5   : > { %s2773_s6 = scalar_lea.hbm %s4478_s30, 8192  ;;  %s2777_s17 = scalar_lea.hbm %s4562_s3, 16384 }
 0x3e6   : > { %p2774_p9 = scmp.ne.s32.totalorder %s4478_s30, %s2773_s6  ;;  %p2778_p6 = scmp.lt.s32.totalorder %s4478_s30, %s4562_s3 }
 0x3e7   : > { %p2779_p11 = scmp.lt.s32.totalorder %s2777_s17, %s2773_s6 }
 0x3e8   : > { %p2775_p1 = pnand %p2774_p9, %p4691_p13 }
 0x3e9   : > { %p2780_p12 = por %p2779_p11, %p2778_p6 }
 0x3ea   : > { %p2776_p3 = pneg %p2775_p1 }
 0x3ec   : > { %p2781_p4 = pnand %p2780_p12, %p2776_p3 }
 0x3ee   : > { %2784 = shalt.err (!%p2781_p4)
}
 0x3ef   : > { %s2839_s22 = smov 256   ;;  %s2840_s26 = smov 16  }
 0x3f0   : > { %2566 = dma.vmem_to_hbm [thread:$0]  (%p4691_p13), %s4480_s28, 8192, %s4478_s30, %s2245_s9, %s2839_s22, %s2839_s22, %s2840_s26  }
 0x3f1 PF: > { %s2289_s27 = sand.u32 1, %s2815_s12   ;;  %p4799_p5 = scmp.ne.s32.totalorder %s4619_s25, 0 }
 0x3f2   : > { %p4800_p7 = scmp.ge.s32.totalorder %s2827_s15, 2  ;;  %s2290_s16 = scalar_lea.sflag [#allocation4], %s2289_s27 }
 0x3f4   : > { %p2574_p8 = pnand %p4800_p7, %p4799_p5 }
 0x3f6   : > { %p2575_p10 = pneg %p2574_p8 }
 0x3f8   : > { %2806 = dma.done.wait (%p2575_p10), %s2290_s16, 1024  }
 0x3f9   : > { %2808 = vsyncadd (%p2575_p10), %s2290_s16, 4294966272  ;;  %s2299_s29 = scalar_lea.sflag [#allocation7], %s2289_s27 }
 0x3fa   : > { %2810 = dma.done.wait (%p2575_p10), %s2299_s29, 8192  }
 0x3fb   : > { %2812 = vsyncadd (%p2575_p10), %s2299_s29, 4294959104  ;;  %p20_p13 = scmp.ge.s32.totalorder %s2886_s18, 4   ;;  %s4801_s12 = smov %s2819_s13 }
 0x3fc   : > { %s4802_s13 = smov %s2823_s14  ;;  %s4803_s14 = smov %s2898_s21 }
 0x3fd   : > { %s4804_s15 = smov %s2886_s18  ;;  %22 = sbr.rel (!%p20_p13) target bundleno = 7 (0x7), region = 93 }
 0x402   :  { %2304 = vsyncpa [#allocation3], 1 }
 0x403   :  { %2306 = vsyncpa [#allocation3 + $0x1], 1 }
 0x404   :  { %2307 = vsyncpa [#allocation4], 1 }
 0x405   :  { %2309 = vsyncpa [#allocation4 + $0x1], 1 }
 0x406   :  { %2310 = vsyncpa [#allocation7], 1 }
 0x407   :  { %2312 = vsyncpa [#allocation7 + $0x1], 1 }

</bundles_post_ra>
